<compile_context>
chip_gen: v7x
topology: tpu7x:2x2x1
jax: 0.10.0
libtpu: 0.0.40
codegen_flags: <defaults>
</compile_context>

<pallas_src>
import functools

import numpy as np

import jax
import jax.numpy as jnp
from jax.experimental import pallas as pl
from jax.experimental.pallas import tpu as pltpu  # noqa: F401  (TPU backend)


def _full_spec(shape):
    # Whole-array block, no grid; full-extent blocks satisfy TPU tiling rules.
    return pl.BlockSpec(shape, lambda: (0,) * len(shape))


# ----------------------------------------------------------------------------
# The fused kernel
# ----------------------------------------------------------------------------
def _lenet5_kernel(a0_ref, w1b_ref, brow1_ref, s1r_ref, s1c_ref,
                   w2b_ref, brow2_ref, s2_ref, w3p_ref, b3_ref,
                   w4_ref, b4_ref, w5_ref, b5_ref, out_ref, *, batch):
    f32 = jnp.float32
    r1 = batch * 32 - 4            # conv1 output rows (incl. inter-image junk rows)
    r2 = batch * 14 - 4            # conv2 output rows

    a0 = a0_ref[...]               # (batch*32, 28): rows = n*32 + h (zero padded)
    w1b = w1b_ref[...]             # (5, 28, 168) banded conv1 weights

    # ---- conv1 (5x5, pad=2) + ReLU: 5 shifted row slices x banded matmuls ----
    o1 = jnp.dot(a0[0:r1], w1b[0], preferred_element_type=f32)
    for i in range(1, 5):
        o1 = o1 + jnp.dot(a0[i:i + r1], w1b[i], preferred_element_type=f32)
    o1 = jnp.maximum(o1 + brow1_ref[...], 0.0)            # (r1, 28*6), col = x*6+oc

    # ---- maxpool1 2x2: shifted maxes + 0/1 selection matmuls ----
    mx1 = jnp.maximum(o1[:, :162], o1[:, 6:168])          # max over dx
    my1 = jnp.maximum(mx1[:r1 - 1], mx1[1:r1])            # max over dy
    pool1 = jnp.dot(s1r_ref[...],
                    jnp.dot(my1, s1c_ref[...], preferred_element_type=f32),
                    preferred_element_type=f32)           # (batch*14, 14*6)

    # ---- conv2 (5x5, valid) + ReLU ----
    w2b = w2b_ref[...]                                    # (5, 84, 160)
    o2 = jnp.dot(pool1[0:r2], w2b[0], preferred_element_type=f32)
    for i in range(1, 5):
        o2 = o2 + jnp.dot(pool1[i:i + r2], w2b[i], preferred_element_type=f32)
    o2 = jnp.maximum(o2 + brow2_ref[...], 0.0)            # (r2, 10*16), col = x*16+oc

    # ---- maxpool2 + NCHW flatten + fc3 (folded into permuted fc3 weights) ----
    mx2 = jnp.maximum(o2[:, :144], o2[:, 16:160])
    my2 = jnp.maximum(mx2[:r2 - 1], mx2[1:r2])            # (batch*14-5, 9*16)
    s2 = s2_ref[...]                                      # (5, batch, batch*14-5)
    w3p = w3p_ref[...]                                    # (5, 144, 120)
    z3 = b3_ref[...]                                      # (1, 120), broadcasts
    for yo in range(5):
        rows = jnp.dot(s2[yo], my2, preferred_element_type=f32)       # (batch, 144)
        z3 = z3 + jnp.dot(rows, w3p[yo], preferred_element_type=f32)  # (batch, 120)
    z3 = jnp.maximum(z3, 0.0)

    # ---- fc4 + ReLU, fc5 + log_softmax ----
    z4 = jnp.maximum(
        jnp.dot(z3, w4_ref[...], preferred_element_type=f32) + b4_ref[...], 0.0)
    z5 = jnp.dot(z4, w5_ref[...], preferred_element_type=f32) + b5_ref[...]
    z5 = z5 - jnp.max(z5, axis=-1, keepdims=True)
    out_ref[...] = z5 - jnp.log(jnp.sum(jnp.exp(z5), axis=-1, keepdims=True))


# ----------------------------------------------------------------------------
# One-time weight packing (init-time, not in the traced forward)
# ----------------------------------------------------------------------------
def pack_params(p):
    """Pack PyTorch-layout LeNet-5 weights into kernel-ready matrices."""
    f32 = jnp.float32

    # conv1: banded matrices, one per tap row i.  Band folds the 5 column taps
    # and the width-2 zero padding:  W1b[i, wc, x*6+oc] = w1[oc,0,i, wc-x+2].
    w1v = jnp.transpose(p["conv1_w"][:, 0], (1, 2, 0))                 # (i, j, oc)
    w1b = sum(
        jnp.einsum("io,ab->iabo", w1v[:, j, :],
                   jnp.eye(28, 28, k=2 - j, dtype=f32))
        for j in range(5)).reshape(5, 28, 28 * 6)
    brow1 = jnp.tile(p["conv1_b"], 28).reshape(1, 28 * 6)

    # conv2 (valid conv): W2b[i, x'*6+ic, x*16+oc] = w2[oc,ic,i, x'-x].
    w2v = jnp.transpose(p["conv2_w"], (2, 3, 1, 0))                    # (i, j, ic, oc)
    w2b = sum(
        jnp.einsum("ico,ab->iacbo", w2v[:, j],
                   jnp.eye(14, 10, k=-j, dtype=f32))
        for j in range(5)).reshape(5, 14 * 6, 10 * 16)
    brow2 = jnp.tile(p["conv2_b"], 10).reshape(1, 10 * 16)

    # fc3: fold the pool-2 column subsample and the PyTorch NCHW flatten
    # (feature = oc*25 + yo*5 + xo) into a pre-permuted weight, one (144,120)
    # slab per pooled row yo (odd-x rows are zero -> they never contribute).
    w3r = jnp.transpose(p["fc3_w"].reshape(120, 16, 5, 5), (2, 3, 1, 0))  # (yo,xo,oc,k)
    w3p = jnp.zeros((5, 9, 16, 120), f32).at[:, ::2].set(w3r).reshape(5, 144, 120)

    return {
        "w1b": w1b, "brow1": brow1,
        "w2b": w2b, "brow2": brow2,
        "w3p": w3p, "b3": p["fc3_b"].reshape(1, 120),
        "w4t": p["fc4_w"].T, "b4": p["fc4_b"].reshape(1, 84),
        "w5t": p["fc5_w"].T, "b5": p["fc5_b"].reshape(1, 10),
    }


def _selection_mats(n_img):
    """0/1 matrices implementing the 2x-subsampling of the max-pools.

    Built with numpy at trace time (batch size is static), so they are baked
    into the program as constants."""
    s1r = np.zeros((n_img * 14, n_img * 32 - 5), np.float32)
    for n in range(n_img):
        for yo in range(14):
            s1r[n * 14 + yo, n * 32 + 2 * yo] = 1.0
    s1c = np.zeros((27 * 6, 14 * 6), np.float32)
    for xo in range(14):
        for c in range(6):
            s1c[12 * xo + c, 6 * xo + c] = 1.0
    s2 = np.zeros((5, n_img, n_img * 14 - 5), np.float32)
    for yo in range(5):
        for n in range(n_img):
            s2[yo, n, n * 14 + 2 * yo] = 1.0
    return s1r, s1c, s2


# ----------------------------------------------------------------------------
# Forward pass (single pallas_call)
# ----------------------------------------------------------------------------
def lenet5_forward(packed, x):
    # x: (N, 1, 28, 28) float32, same as the PyTorch module's input.
    n_img = x.shape[0]
    s1r, s1c, s2 = _selection_mats(n_img)

    # Row-block conv1 input: pad H by 2 (W padding lives inside the banded
    # weights) and stack images along rows -> (N*32, 28).
    a0 = jnp.pad(x[:, 0], ((0, 0), (2, 2), (0, 0))).reshape(n_img * 32, 28)

    operands = (a0, packed["w1b"], packed["brow1"], s1r, s1c,
                packed["w2b"], packed["brow2"], s2, packed["w3p"], packed["b3"],
                packed["w4t"], packed["b4"], packed["w5t"], packed["b5"])

    return pl.pallas_call(
        functools.partial(_lenet5_kernel, batch=n_img),
        out_shape=jax.ShapeDtypeStruct((n_img, 10), jnp.float32),
        in_specs=[_full_spec(op.shape) for op in operands],
        out_specs=_full_spec((n_img, 10)),
    )(*operands)


# ----------------------------------------------------------------------------
# Parameters (PyTorch-style init) and a pure-JAX reference for validation
# ----------------------------------------------------------------------------
def init_params(key):
    ks = jax.random.split(key, 10)

    def u(k, shape, fan_in):
        bound = 1.0 / jnp.sqrt(jnp.float32(fan_in))
        return jax.random.uniform(k, shape, jnp.float32, -bound, bound)

    return {
        "conv1_w": u(ks[0], (6, 1, 5, 5), 1 * 25),
        "conv1_b": u(ks[1], (6,), 1 * 25),
        "conv2_w": u(ks[2], (16, 6, 5, 5), 6 * 25),
        "conv2_b": u(ks[3], (16,), 6 * 25),
        "fc3_w": u(ks[4], (120, 400), 400),
        "fc3_b": u(ks[5], (120,), 400),
        "fc4_w": u(ks[6], (84, 120), 120),
        "fc4_b": u(ks[7], (84,), 120),
        "fc5_w": u(ks[8], (10, 84), 84),
        "fc5_b": u(ks[9], (10,), 84),
    }


def reference_forward(params, x):
    """Plain-JAX LeNet-5 (mirrors the PyTorch module) for correctness checks."""
    n_img = x.shape[0]
    hi = jax.lax.Precision.HIGHEST

    def conv_nhwc(xin, w, b):
        oc, ic, kh, kw = w.shape
        _, h, ww, _ = xin.shape
        oh, ow = h - kh + 1, ww - kw + 1
        cols = jnp.stack(
            [xin[:, i:i + oh, j:j + ow, :] for i in range(kh) for j in range(kw)],
            axis=-1)
        wt = w.reshape(oc, ic, kh * kw)
        return jnp.einsum("nhwct,oct->nhwo", cols, wt, precision=hi) + b

    xp = jnp.pad(x[:, 0], ((0, 0), (2, 2), (2, 2)))[..., None]     # (N,32,32,1)
    a1 = jax.nn.relu(conv_nhwc(xp, params["conv1_w"], params["conv1_b"]))
    p1 = jnp.max(a1.reshape(n_img, 14, 2, 14, 2, 6), axis=(2, 4))
    a2 = jax.nn.relu(conv_nhwc(p1, params["conv2_w"], params["conv2_b"]))
    p2 = jnp.max(a2.reshape(n_img, 5, 2, 5, 2, 16), axis=(2, 4))
    flat = jnp.transpose(p2, (0, 3, 1, 2)).reshape(n_img, 400)
    z3 = jax.nn.relu(jnp.dot(flat, params["fc3_w"].T, precision=hi) + params["fc3_b"])
    z4 = jax.nn.relu(jnp.dot(z3, params["fc4_w"].T, precision=hi) + params["fc4_b"])
    z5 = jnp.dot(z4, params["fc5_w"].T, precision=hi) + params["fc5_b"]
    return jax.nn.log_softmax(z5, axis=-1)


if __name__ == "__main__":
    key = jax.random.PRNGKey(0)
    pkey, xkey = jax.random.split(key)
    params = init_params(pkey)
    packed = pack_params(params)          # done ONCE, outside the forward pass
    x = jax.random.normal(xkey, (2, 1, 28, 28), dtype=jnp.float32)

    fwd = jax.jit(lenet5_forward)
    out = jax.block_until_ready(fwd(packed, x))

    assert out.shape == (2, 10), out.shape
    assert bool(jnp.all(jnp.isfinite(out)))
    row_sums = jnp.exp(out).sum(axis=-1)          # log_softmax rows sum to 1
    assert bool(jnp.all(jnp.abs(row_sums - 1.0) < 1e-4))

    ref = reference_forward(params, x)
    max_err = float(jnp.max(jnp.abs(out - ref)))
    assert bool(jnp.allclose(out, ref, atol=2e-2, rtol=2e-2)), max_err

    print("KERNEL_OK")
</pallas_src>

<mosaic_0001>
module attributes {stable_mosaic.version = 11 : i64} {
  func.func @_lenet5_kernel(%arg0: memref<64x28xf32, #tpu.memory_space<vmem>>, %arg1: memref<5x28x168xf32, #tpu.memory_space<vmem>>, %arg2: memref<1x168xf32, #tpu.memory_space<vmem>>, %arg3: memref<28x59xf32, #tpu.memory_space<vmem>>, %arg4: memref<162x84xf32, #tpu.memory_space<vmem>>, %arg5: memref<5x84x160xf32, #tpu.memory_space<vmem>>, %arg6: memref<1x160xf32, #tpu.memory_space<vmem>>, %arg7: memref<5x2x23xf32, #tpu.memory_space<vmem>>, %arg8: memref<5x144x120xf32, #tpu.memory_space<vmem>>, %arg9: memref<1x120xf32, #tpu.memory_space<vmem>>, %arg10: memref<120x84xf32, #tpu.memory_space<vmem>>, %arg11: memref<1x84xf32, #tpu.memory_space<vmem>>, %arg12: memref<84x10xf32, #tpu.memory_space<vmem>>, %arg13: memref<1x10xf32, #tpu.memory_space<vmem>>, %arg14: memref<2x10xf32, #tpu.memory_space<vmem>>) attributes {dimension_semantics = [], scalar_prefetch = 0 : i64, scratch_operands = 0 : i64, tpu.core_type = #tpu.core_type<tc>} {
    %c0 = arith.constant 0 : index
    %c0_0 = arith.constant 0 : index
    %0 = vector.load %arg0[%c0, %c0_0] : memref<64x28xf32, #tpu.memory_space<vmem>>, vector<64x28xf32>
    %c0_1 = arith.constant 0 : index
    %c0_2 = arith.constant 0 : index
    %c0_3 = arith.constant 0 : index
    %1 = vector.load %arg1[%c0_1, %c0_2, %c0_3] : memref<5x28x168xf32, #tpu.memory_space<vmem>>, vector<5x28x168xf32>
    %2 = vector.extract_strided_slice %0 {offsets = [0, 0], sizes = [60, 28], strides = [1, 1]} : vector<64x28xf32> to vector<60x28xf32>
    %3 = vector.extract_strided_slice %1 {offsets = [0, 0, 0], sizes = [1, 28, 168], strides = [1, 1, 1]} : vector<5x28x168xf32> to vector<1x28x168xf32>
    %4 = vector.shape_cast %3 : vector<1x28x168xf32> to vector<28x168xf32>
    %cst = arith.constant dense<0.000000e+00> : vector<60x168xf32>
    %5 = tpu.matmul %2, %4, %cst {dimension_numbers = #tpu.dot_dimension_numbers<[1], [0], [0], [1], [0, 0, 1, 1], [], []>} : vector<60x28xf32>, vector<28x168xf32>, vector<60x168xf32> -> vector<60x168xf32>
    %6 = vector.extract_strided_slice %0 {offsets = [1, 0], sizes = [60, 28], strides = [1, 1]} : vector<64x28xf32> to vector<60x28xf32>
    %7 = vector.extract_strided_slice %1 {offsets = [1, 0, 0], sizes = [1, 28, 168], strides = [1, 1, 1]} : vector<5x28x168xf32> to vector<1x28x168xf32>
    %8 = vector.shape_cast %7 : vector<1x28x168xf32> to vector<28x168xf32>
    %cst_4 = arith.constant dense<0.000000e+00> : vector<60x168xf32>
    %9 = tpu.matmul %6, %8, %cst_4 {dimension_numbers = #tpu.dot_dimension_numbers<[1], [0], [0], [1], [0, 0, 1, 1], [], []>} : vector<60x28xf32>, vector<28x168xf32>, vector<60x168xf32> -> vector<60x168xf32>
    %10 = arith.addf %5, %9 : vector<60x168xf32>
    %11 = vector.extract_strided_slice %0 {offsets = [2, 0], sizes = [60, 28], strides = [1, 1]} : vector<64x28xf32> to vector<60x28xf32>
    %12 = vector.extract_strided_slice %1 {offsets = [2, 0, 0], sizes = [1, 28, 168], strides = [1, 1, 1]} : vector<5x28x168xf32> to vector<1x28x168xf32>
    %13 = vector.shape_cast %12 : vector<1x28x168xf32> to vector<28x168xf32>
    %cst_5 = arith.constant dense<0.000000e+00> : vector<60x168xf32>
    %14 = tpu.matmul %11, %13, %cst_5 {dimension_numbers = #tpu.dot_dimension_numbers<[1], [0], [0], [1], [0, 0, 1, 1], [], []>} : vector<60x28xf32>, vector<28x168xf32>, vector<60x168xf32> -> vector<60x168xf32>
    %15 = arith.addf %10, %14 : vector<60x168xf32>
    %16 = vector.extract_strided_slice %0 {offsets = [3, 0], sizes = [60, 28], strides = [1, 1]} : vector<64x28xf32> to vector<60x28xf32>
    %17 = vector.extract_strided_slice %1 {offsets = [3, 0, 0], sizes = [1, 28, 168], strides = [1, 1, 1]} : vector<5x28x168xf32> to vector<1x28x168xf32>
    %18 = vector.shape_cast %17 : vector<1x28x168xf32> to vector<28x168xf32>
    %cst_6 = arith.constant dense<0.000000e+00> : vector<60x168xf32>
    %19 = tpu.matmul %16, %18, %cst_6 {dimension_numbers = #tpu.dot_dimension_numbers<[1], [0], [0], [1], [0, 0, 1, 1], [], []>} : vector<60x28xf32>, vector<28x168xf32>, vector<60x168xf32> -> vector<60x168xf32>
    %20 = arith.addf %15, %19 : vector<60x168xf32>
    %21 = vector.extract_strided_slice %0 {offsets = [4, 0], sizes = [60, 28], strides = [1, 1]} : vector<64x28xf32> to vector<60x28xf32>
    %22 = vector.extract_strided_slice %1 {offsets = [4, 0, 0], sizes = [1, 28, 168], strides = [1, 1, 1]} : vector<5x28x168xf32> to vector<1x28x168xf32>
    %23 = vector.shape_cast %22 : vector<1x28x168xf32> to vector<28x168xf32>
    %cst_7 = arith.constant dense<0.000000e+00> : vector<60x168xf32>
    %24 = tpu.matmul %21, %23, %cst_7 {dimension_numbers = #tpu.dot_dimension_numbers<[1], [0], [0], [1], [0, 0, 1, 1], [], []>} : vector<60x28xf32>, vector<28x168xf32>, vector<60x168xf32> -> vector<60x168xf32>
    %25 = arith.addf %20, %24 : vector<60x168xf32>
    %c0_8 = arith.constant 0 : index
    %c0_9 = arith.constant 0 : index
    %26 = vector.load %arg2[%c0_8, %c0_9] : memref<1x168xf32, #tpu.memory_space<vmem>>, vector<1x168xf32>
    %27 = vector.broadcast %26 : vector<1x168xf32> to vector<60x168xf32>
    %28 = arith.addf %25, %27 : vector<60x168xf32>
    %cst_10 = arith.constant 0.000000e+00 : f32
    %29 = vector.broadcast %cst_10 : f32 to vector<60x168xf32>
    %30 = arith.maximumf %28, %29 : vector<60x168xf32>
    %31 = vector.extract_strided_slice %30 {offsets = [0, 0], sizes = [60, 162], strides = [1, 1]} : vector<60x168xf32> to vector<60x162xf32>
    %32 = vector.extract_strided_slice %30 {offsets = [0, 6], sizes = [60, 162], strides = [1, 1]} : vector<60x168xf32> to vector<60x162xf32>
    %33 = arith.maximumf %31, %32 : vector<60x162xf32>
    %34 = vector.extract_strided_slice %33 {offsets = [0, 0], sizes = [59, 162], strides = [1, 1]} : vector<60x162xf32> to vector<59x162xf32>
    %35 = vector.extract_strided_slice %33 {offsets = [1, 0], sizes = [59, 162], strides = [1, 1]} : vector<60x162xf32> to vector<59x162xf32>
    %36 = arith.maximumf %34, %35 : vector<59x162xf32>
    %c0_11 = arith.constant 0 : index
    %c0_12 = arith.constant 0 : index
    %37 = vector.load %arg3[%c0_11, %c0_12] : memref<28x59xf32, #tpu.memory_space<vmem>>, vector<28x59xf32>
    %c0_13 = arith.constant 0 : index
    %c0_14 = arith.constant 0 : index
    %38 = vector.load %arg4[%c0_13, %c0_14] : memref<162x84xf32, #tpu.memory_space<vmem>>, vector<162x84xf32>
    %cst_15 = arith.constant dense<0.000000e+00> : vector<59x84xf32>
    %39 = tpu.matmul %36, %38, %cst_15 {dimension_numbers = #tpu.dot_dimension_numbers<[1], [0], [0], [1], [0, 0, 1, 1], [], []>} : vector<59x162xf32>, vector<162x84xf32>, vector<59x84xf32> -> vector<59x84xf32>
    %cst_16 = arith.constant dense<0.000000e+00> : vector<28x84xf32>
    %40 = tpu.matmul %37, %39, %cst_16 {dimension_numbers = #tpu.dot_dimension_numbers<[1], [0], [0], [1], [0, 0, 1, 1], [], []>} : vector<28x59xf32>, vector<59x84xf32>, vector<28x84xf32> -> vector<28x84xf32>
    %c0_17 = arith.constant 0 : index
    %c0_18 = arith.constant 0 : index
    %c0_19 = arith.constant 0 : index
    %41 = vector.load %arg5[%c0_17, %c0_18, %c0_19] : memref<5x84x160xf32, #tpu.memory_space<vmem>>, vector<5x84x160xf32>
    %42 = vector.extract_strided_slice %40 {offsets = [0, 0], sizes = [24, 84], strides = [1, 1]} : vector<28x84xf32> to vector<24x84xf32>
    %43 = vector.extract_strided_slice %41 {offsets = [0, 0, 0], sizes = [1, 84, 160], strides = [1, 1, 1]} : vector<5x84x160xf32> to vector<1x84x160xf32>
    %44 = vector.shape_cast %43 : vector<1x84x160xf32> to vector<84x160xf32>
    %cst_20 = arith.constant dense<0.000000e+00> : vector<24x160xf32>
    %45 = tpu.matmul %42, %44, %cst_20 {dimension_numbers = #tpu.dot_dimension_numbers<[1], [0], [0], [1], [0, 0, 1, 1], [], []>} : vector<24x84xf32>, vector<84x160xf32>, vector<24x160xf32> -> vector<24x160xf32>
    %46 = vector.extract_strided_slice %40 {offsets = [1, 0], sizes = [24, 84], strides = [1, 1]} : vector<28x84xf32> to vector<24x84xf32>
    %47 = vector.extract_strided_slice %41 {offsets = [1, 0, 0], sizes = [1, 84, 160], strides = [1, 1, 1]} : vector<5x84x160xf32> to vector<1x84x160xf32>
    %48 = vector.shape_cast %47 : vector<1x84x160xf32> to vector<84x160xf32>
    %cst_21 = arith.constant dense<0.000000e+00> : vector<24x160xf32>
    %49 = tpu.matmul %46, %48, %cst_21 {dimension_numbers = #tpu.dot_dimension_numbers<[1], [0], [0], [1], [0, 0, 1, 1], [], []>} : vector<24x84xf32>, vector<84x160xf32>, vector<24x160xf32> -> vector<24x160xf32>
    %50 = arith.addf %45, %49 : vector<24x160xf32>
    %51 = vector.extract_strided_slice %40 {offsets = [2, 0], sizes = [24, 84], strides = [1, 1]} : vector<28x84xf32> to vector<24x84xf32>
    %52 = vector.extract_strided_slice %41 {offsets = [2, 0, 0], sizes = [1, 84, 160], strides = [1, 1, 1]} : vector<5x84x160xf32> to vector<1x84x160xf32>
    %53 = vector.shape_cast %52 : vector<1x84x160xf32> to vector<84x160xf32>
    %cst_22 = arith.constant dense<0.000000e+00> : vector<24x160xf32>
    %54 = tpu.matmul %51, %53, %cst_22 {dimension_numbers = #tpu.dot_dimension_numbers<[1], [0], [0], [1], [0, 0, 1, 1], [], []>} : vector<24x84xf32>, vector<84x160xf32>, vector<24x160xf32> -> vector<24x160xf32>
    %55 = arith.addf %50, %54 : vector<24x160xf32>
    %56 = vector.extract_strided_slice %40 {offsets = [3, 0], sizes = [24, 84], strides = [1, 1]} : vector<28x84xf32> to vector<24x84xf32>
    %57 = vector.extract_strided_slice %41 {offsets = [3, 0, 0], sizes = [1, 84, 160], strides = [1, 1, 1]} : vector<5x84x160xf32> to vector<1x84x160xf32>
    %58 = vector.shape_cast %57 : vector<1x84x160xf32> to vector<84x160xf32>
    %cst_23 = arith.constant dense<0.000000e+00> : vector<24x160xf32>
    %59 = tpu.matmul %56, %58, %cst_23 {dimension_numbers = #tpu.dot_dimension_numbers<[1], [0], [0], [1], [0, 0, 1, 1], [], []>} : vector<24x84xf32>, vector<84x160xf32>, vector<24x160xf32> -> vector<24x160xf32>
    %60 = arith.addf %55, %59 : vector<24x160xf32>
    %61 = vector.extract_strided_slice %40 {offsets = [4, 0], sizes = [24, 84], strides = [1, 1]} : vector<28x84xf32> to vector<24x84xf32>
    %62 = vector.extract_strided_slice %41 {offsets = [4, 0, 0], sizes = [1, 84, 160], strides = [1, 1, 1]} : vector<5x84x160xf32> to vector<1x84x160xf32>
    %63 = vector.shape_cast %62 : vector<1x84x160xf32> to vector<84x160xf32>
    %cst_24 = arith.constant dense<0.000000e+00> : vector<24x160xf32>
    %64 = tpu.matmul %61, %63, %cst_24 {dimension_numbers = #tpu.dot_dimension_numbers<[1], [0], [0], [1], [0, 0, 1, 1], [], []>} : vector<24x84xf32>, vector<84x160xf32>, vector<24x160xf32> -> vector<24x160xf32>
    %65 = arith.addf %60, %64 : vector<24x160xf32>
    %c0_25 = arith.constant 0 : index
    %c0_26 = arith.constant 0 : index
    %66 = vector.load %arg6[%c0_25, %c0_26] : memref<1x160xf32, #tpu.memory_space<vmem>>, vector<1x160xf32>
    %67 = vector.broadcast %66 : vector<1x160xf32> to vector<24x160xf32>
    %68 = arith.addf %65, %67 : vector<24x160xf32>
    %cst_27 = arith.constant 0.000000e+00 : f32
    %69 = vector.broadcast %cst_27 : f32 to vector<24x160xf32>
    %70 = arith.maximumf %68, %69 : vector<24x160xf32>
    %71 = vector.extract_strided_slice %70 {offsets = [0, 0], sizes = [24, 144], strides = [1, 1]} : vector<24x160xf32> to vector<24x144xf32>
    %72 = vector.extract_strided_slice %70 {offsets = [0, 16], sizes = [24, 144], strides = [1, 1]} : vector<24x160xf32> to vector<24x144xf32>
    %73 = arith.maximumf %71, %72 : vector<24x144xf32>
    %74 = vector.extract_strided_slice %73 {offsets = [0, 0], sizes = [23, 144], strides = [1, 1]} : vector<24x144xf32> to vector<23x144xf32>
    %75 = vector.extract_strided_slice %73 {offsets = [1, 0], sizes = [23, 144], strides = [1, 1]} : vector<24x144xf32> to vector<23x144xf32>
    %76 = arith.maximumf %74, %75 : vector<23x144xf32>
    %c0_28 = arith.constant 0 : index
    %c0_29 = arith.constant 0 : index
    %c0_30 = arith.constant 0 : index
    %77 = vector.load %arg7[%c0_28, %c0_29, %c0_30] : memref<5x2x23xf32, #tpu.memory_space<vmem>>, vector<5x2x23xf32>
    %c0_31 = arith.constant 0 : index
    %c0_32 = arith.constant 0 : index
    %c0_33 = arith.constant 0 : index
    %78 = vector.load %arg8[%c0_31, %c0_32, %c0_33] : memref<5x144x120xf32, #tpu.memory_space<vmem>>, vector<5x144x120xf32>
    %c0_34 = arith.constant 0 : index
    %c0_35 = arith.constant 0 : index
    %79 = vector.load %arg9[%c0_34, %c0_35] : memref<1x120xf32, #tpu.memory_space<vmem>>, vector<1x120xf32>
    %80 = vector.extract_strided_slice %77 {offsets = [0, 0, 0], sizes = [1, 2, 23], strides = [1, 1, 1]} : vector<5x2x23xf32> to vector<1x2x23xf32>
    %81 = vector.shape_cast %80 : vector<1x2x23xf32> to vector<2x23xf32>
    %cst_36 = arith.constant dense<0.000000e+00> : vector<2x144xf32>
    %82 = tpu.matmul %81, %76, %cst_36 {dimension_numbers = #tpu.dot_dimension_numbers<[1], [0], [0], [1], [0, 0, 1, 1], [], []>} : vector<2x23xf32>, vector<23x144xf32>, vector<2x144xf32> -> vector<2x144xf32>
    %83 = vector.extract_strided_slice %78 {offsets = [0, 0, 0], sizes = [1, 144, 120], strides = [1, 1, 1]} : vector<5x144x120xf32> to vector<1x144x120xf32>
    %84 = vector.shape_cast %83 : vector<1x144x120xf32> to vector<144x120xf32>
    %cst_37 = arith.constant dense<0.000000e+00> : vector<2x120xf32>
    %85 = tpu.matmul %82, %84, %cst_37 {dimension_numbers = #tpu.dot_dimension_numbers<[1], [0], [0], [1], [0, 0, 1, 1], [], []>} : vector<2x144xf32>, vector<144x120xf32>, vector<2x120xf32> -> vector<2x120xf32>
    %86 = vector.broadcast %79 : vector<1x120xf32> to vector<2x120xf32>
    %87 = arith.addf %86, %85 : vector<2x120xf32>
    %88 = vector.extract_strided_slice %77 {offsets = [1, 0, 0], sizes = [1, 2, 23], strides = [1, 1, 1]} : vector<5x2x23xf32> to vector<1x2x23xf32>
    %89 = vector.shape_cast %88 : vector<1x2x23xf32> to vector<2x23xf32>
    %cst_38 = arith.constant dense<0.000000e+00> : vector<2x144xf32>
    %90 = tpu.matmul %89, %76, %cst_38 {dimension_numbers = #tpu.dot_dimension_numbers<[1], [0], [0], [1], [0, 0, 1, 1], [], []>} : vector<2x23xf32>, vector<23x144xf32>, vector<2x144xf32> -> vector<2x144xf32>
    %91 = vector.extract_strided_slice %78 {offsets = [1, 0, 0], sizes = [1, 144, 120], strides = [1, 1, 1]} : vector<5x144x120xf32> to vector<1x144x120xf32>
    %92 = vector.shape_cast %91 : vector<1x144x120xf32> to vector<144x120xf32>
    %cst_39 = arith.constant dense<0.000000e+00> : vector<2x120xf32>
    %93 = tpu.matmul %90, %92, %cst_39 {dimension_numbers = #tpu.dot_dimension_numbers<[1], [0], [0], [1], [0, 0, 1, 1], [], []>} : vector<2x144xf32>, vector<144x120xf32>, vector<2x120xf32> -> vector<2x120xf32>
    %94 = arith.addf %87, %93 : vector<2x120xf32>
    %95 = vector.extract_strided_slice %77 {offsets = [2, 0, 0], sizes = [1, 2, 23], strides = [1, 1, 1]} : vector<5x2x23xf32> to vector<1x2x23xf32>
    %96 = vector.shape_cast %95 : vector<1x2x23xf32> to vector<2x23xf32>
    %cst_40 = arith.constant dense<0.000000e+00> : vector<2x144xf32>
    %97 = tpu.matmul %96, %76, %cst_40 {dimension_numbers = #tpu.dot_dimension_numbers<[1], [0], [0], [1], [0, 0, 1, 1], [], []>} : vector<2x23xf32>, vector<23x144xf32>, vector<2x144xf32> -> vector<2x144xf32>
    %98 = vector.extract_strided_slice %78 {offsets = [2, 0, 0], sizes = [1, 144, 120], strides = [1, 1, 1]} : vector<5x144x120xf32> to vector<1x144x120xf32>
    %99 = vector.shape_cast %98 : vector<1x144x120xf32> to vector<144x120xf32>
    %cst_41 = arith.constant dense<0.000000e+00> : vector<2x120xf32>
    %100 = tpu.matmul %97, %99, %cst_41 {dimension_numbers = #tpu.dot_dimension_numbers<[1], [0], [0], [1], [0, 0, 1, 1], [], []>} : vector<2x144xf32>, vector<144x120xf32>, vector<2x120xf32> -> vector<2x120xf32>
    %101 = arith.addf %94, %100 : vector<2x120xf32>
    %102 = vector.extract_strided_slice %77 {offsets = [3, 0, 0], sizes = [1, 2, 23], strides = [1, 1, 1]} : vector<5x2x23xf32> to vector<1x2x23xf32>
    %103 = vector.shape_cast %102 : vector<1x2x23xf32> to vector<2x23xf32>
    %cst_42 = arith.constant dense<0.000000e+00> : vector<2x144xf32>
    %104 = tpu.matmul %103, %76, %cst_42 {dimension_numbers = #tpu.dot_dimension_numbers<[1], [0], [0], [1], [0, 0, 1, 1], [], []>} : vector<2x23xf32>, vector<23x144xf32>, vector<2x144xf32> -> vector<2x144xf32>
    %105 = vector.extract_strided_slice %78 {offsets = [3, 0, 0], sizes = [1, 144, 120], strides = [1, 1, 1]} : vector<5x144x120xf32> to vector<1x144x120xf32>
    %106 = vector.shape_cast %105 : vector<1x144x120xf32> to vector<144x120xf32>
    %cst_43 = arith.constant dense<0.000000e+00> : vector<2x120xf32>
    %107 = tpu.matmul %104, %106, %cst_43 {dimension_numbers = #tpu.dot_dimension_numbers<[1], [0], [0], [1], [0, 0, 1, 1], [], []>} : vector<2x144xf32>, vector<144x120xf32>, vector<2x120xf32> -> vector<2x120xf32>
    %108 = arith.addf %101, %107 : vector<2x120xf32>
    %109 = vector.extract_strided_slice %77 {offsets = [4, 0, 0], sizes = [1, 2, 23], strides = [1, 1, 1]} : vector<5x2x23xf32> to vector<1x2x23xf32>
    %110 = vector.shape_cast %109 : vector<1x2x23xf32> to vector<2x23xf32>
    %cst_44 = arith.constant dense<0.000000e+00> : vector<2x144xf32>
    %111 = tpu.matmul %110, %76, %cst_44 {dimension_numbers = #tpu.dot_dimension_numbers<[1], [0], [0], [1], [0, 0, 1, 1], [], []>} : vector<2x23xf32>, vector<23x144xf32>, vector<2x144xf32> -> vector<2x144xf32>
    %112 = vector.extract_strided_slice %78 {offsets = [4, 0, 0], sizes = [1, 144, 120], strides = [1, 1, 1]} : vector<5x144x120xf32> to vector<1x144x120xf32>
    %113 = vector.shape_cast %112 : vector<1x144x120xf32> to vector<144x120xf32>
    %cst_45 = arith.constant dense<0.000000e+00> : vector<2x120xf32>
    %114 = tpu.matmul %111, %113, %cst_45 {dimension_numbers = #tpu.dot_dimension_numbers<[1], [0], [0], [1], [0, 0, 1, 1], [], []>} : vector<2x144xf32>, vector<144x120xf32>, vector<2x120xf32> -> vector<2x120xf32>
    %115 = arith.addf %108, %114 : vector<2x120xf32>
    %cst_46 = arith.constant 0.000000e+00 : f32
    %116 = vector.broadcast %cst_46 : f32 to vector<2x120xf32>
    %117 = arith.maximumf %115, %116 : vector<2x120xf32>
    %c0_47 = arith.constant 0 : index
    %c0_48 = arith.constant 0 : index
    %118 = vector.load %arg10[%c0_47, %c0_48] : memref<120x84xf32, #tpu.memory_space<vmem>>, vector<120x84xf32>
    %cst_49 = arith.constant dense<0.000000e+00> : vector<2x84xf32>
    %119 = tpu.matmul %117, %118, %cst_49 {dimension_numbers = #tpu.dot_dimension_numbers<[1], [0], [0], [1], [0, 0, 1, 1], [], []>} : vector<2x120xf32>, vector<120x84xf32>, vector<2x84xf32> -> vector<2x84xf32>
    %c0_50 = arith.constant 0 : index
    %c0_51 = arith.constant 0 : index
    %120 = vector.load %arg11[%c0_50, %c0_51] : memref<1x84xf32, #tpu.memory_space<vmem>>, vector<1x84xf32>
    %121 = vector.broadcast %120 : vector<1x84xf32> to vector<2x84xf32>
    %122 = arith.addf %119, %121 : vector<2x84xf32>
    %cst_52 = arith.constant 0.000000e+00 : f32
    %123 = vector.broadcast %cst_52 : f32 to vector<2x84xf32>
    %124 = arith.maximumf %122, %123 : vector<2x84xf32>
    %c0_53 = arith.constant 0 : index
    %c0_54 = arith.constant 0 : index
    %125 = vector.load %arg12[%c0_53, %c0_54] : memref<84x10xf32, #tpu.memory_space<vmem>>, vector<84x10xf32>
    %cst_55 = arith.constant dense<0.000000e+00> : vector<2x10xf32>
    %126 = tpu.matmul %124, %125, %cst_55 {dimension_numbers = #tpu.dot_dimension_numbers<[1], [0], [0], [1], [0, 0, 1, 1], [], []>} : vector<2x84xf32>, vector<84x10xf32>, vector<2x10xf32> -> vector<2x10xf32>
    %c0_56 = arith.constant 0 : index
    %c0_57 = arith.constant 0 : index
    %127 = vector.load %arg13[%c0_56, %c0_57] : memref<1x10xf32, #tpu.memory_space<vmem>>, vector<1x10xf32>
    %128 = vector.broadcast %127 : vector<1x10xf32> to vector<2x10xf32>
    %129 = arith.addf %126, %128 : vector<2x10xf32>
    %cst_58 = arith.constant dense<0xFF800000> : vector<2xf32>
    %130 = vector.multi_reduction <maximumf>, %129, %cst_58 [1] : vector<2x10xf32> to vector<2xf32>
    %131 = vector.shape_cast %130 : vector<2xf32> to vector<2x1xf32>
    %132 = vector.broadcast %131 : vector<2x1xf32> to vector<2x10xf32>
    %133 = arith.subf %129, %132 : vector<2x10xf32>
    %134 = math.exp %133 : vector<2x10xf32>
    %cst_59 = arith.constant dense<0.000000e+00> : vector<2xf32>
    %135 = vector.multi_reduction <add>, %134, %cst_59 [1] : vector<2x10xf32> to vector<2xf32>
    %136 = vector.shape_cast %135 : vector<2xf32> to vector<2x1xf32>
    %137 = math.log %136 : vector<2x1xf32>
    %138 = vector.broadcast %137 : vector<2x1xf32> to vector<2x10xf32>
    %139 = arith.subf %133, %138 : vector<2x10xf32>
    %c0_60 = arith.constant 0 : index
    %c0_61 = arith.constant 0 : index
    %140 = vector.load %arg14[%c0_60, %c0_61] : memref<2x10xf32, #tpu.memory_space<vmem>>, vector<2x10xf32>
    tpu.vector_store %arg14[%c0_60, %c0_61], %139 {strides = array<i32>} : memref<2x10xf32, #tpu.memory_space<vmem>>, vector<2x10xf32>,
    return
  }
}

</mosaic_0001>

<bundles_post_ra>
// kernel: lenet5_forward.1
= control target key start
LH: loop header
LB: loop body
LE: loop exit
PB: predicated region body
PF: predicated region fallthrough
CT: control target
= control target key end

     0   :  { %vm137_vm0 = vcmask 1043456   ;;  %v3926_v7 = vmov 0.0   ;;  %vm3927_vm1 = vmmov 1   ;;  %vm120_vm3 = vcmask 228352   ;;  %s5643_s0 = inlined_call_operand.vmem [shape: f32[64,28], index: 0, kind: input, shape index: {}]   ;;  %s5644_s1 = inlined_call_operand.vmem [shape: f32[5,28,168], index: 1, kind: input, shape index: {}]   ;;  %s5645_s2 = inlined_call_operand.vmem [shape: f32[1,168], index: 2, kind: input, shape index: {}]   ;;  %s5646_s3 = inlined_call_operand.vmem [shape: f32[28,59], index: 3, kind: input, shape index: {}]   ;;  %s5647_s4 = inlined_call_operand.vmem [shape: f32[162,84], index: 4, kind: input, shape index: {}]   ;;  %s5648_s5 = inlined_call_operand.vmem [shape: f32[5,84,160], index: 5, kind: input, shape index: {}]   ;;  %s5649_s6 = inlined_call_operand.vmem [shape: f32[1,160], index: 6, kind: input, shape index: {}]   ;;  %s5650_s7 = inlined_call_operand.vmem [shape: f32[5,2,23], index: 7, kind: input, shape index: {}]   ;;  %s5651_s8 = inlined_call_operand.vmem [shape: f32[5,144,120], index: 8, kind: input, shape index: {}]   ;;  %s5652_s9 = inlined_call_operand.vmem [shape: f32[1,120], index: 9, kind: input, shape index: {}]   ;;  %s5653_s10 = inlined_call_operand.vmem [shape: f32[120,84], index: 10, kind: input, shape index: {}]   ;;  %s5654_s11 = inlined_call_operand.vmem [shape: f32[1,84], index: 11, kind: input, shape index: {}]   ;;  %s5655_s12 = inlined_call_operand.vmem [shape: f32[84,10], index: 12, kind: input, shape index: {}]   ;;  %s5656_s13 = inlined_call_operand.vmem [shape: f32[1,10], index: 13, kind: input, shape index: {}]   ;;  %s5657_s14 = inlined_call_operand.hbm [shape: f32[2,10], index: 14, kind: output, shape index: {}]  }
   0x1   :  { %v57_v0 = vld [vmem:[%s5644_s1 + $0x8] sm:$0xff]  ;;  %v59_v1 = vld [vmem:[%s5644_s1 + $0x18] sm:$0xff]  ;;  %v56_v2 = vld [vmem:[%s5644_s1] sm:$0xff]  ;;  %343 = vmatprep.mubr.f32.mxu0 %v3926_v7  ;;  %208 = vmatprep.mubr.f32.mxu1 %v3926_v7 }
   0x2   :  { %v3401_v3 = vpack.c.bf16 %v59_v1, %v57_v0  ;;  %v58_v4 = vld [vmem:[%s5644_s1 + $0x10] sm:$0xff]  ;;  %v61_v5 = vld [vmem:[%s5644_s1 + $0x28] sm:$0xff]  ;;  %v63_v6 = vld [vmem:[%s5644_s1 + $0x38] sm:$0xf] }
   0x3   :  { %v3403_v8 = vpack.c.bf16 %v58_v4, %v56_v2  ;;  %vm4030_vm2 = vmpackc.low %vm137_vm0, %vm3927_vm1  ;;  %v3405_v10 = vpack.c.bf16 %v63_v6, %v61_v5  ;;  %v60_v11 = vld [vmem:[%s5644_s1 + $0x20] sm:$0xff]  ;;  %v62_v12 = vld [vmem:[%s5644_s1 + $0x30] sm:$0xf] }
   0x4   :  { %3402 = vmatprep.subr.bf16.mxu0 %v3401_v3  ;;  %v4043_v13 = vld [vmem:[%s5643_s0] sm:$0xff]  ;;  %v73_v14 = vld [vmem:[%s5644_s1 + $0x88] sm:$0xff]  ;;  %v3408_v15 = vpack.c.bf16 %v62_v12, %v60_v11  ;;  %v75_v18 = vld [vmem:[%s5644_s1 + $0x98] sm:$0xff] }
   0x5   :  { %3404 = vmatpush1.bf16.msra.mxu0 %v3403_v8  ;;  %v726_v16 = vrot.slane %v4043_v13, 4  ;;  %v4052_v17 = vld [vmem:[%s5643_s0 + $0x8] sm:$0xff]  ;;  %v3411_v20 = vpack.c.bf16 %v75_v18, %v73_v14  ;;  %v72_v21 = vld [vmem:[%s5644_s1 + $0x80] sm:$0xff]  ;;  %v74_v22 = vld [vmem:[%s5644_s1 + $0x90] sm:$0xff] }
   0x6   :  { %3407 = vmatprep.subr.msk.bf16.mxu0 %vm4030_vm2, %v3405_v10  ;;  %v727_v19 = vrot.slane %v4052_v17, 4  ;;  %v77_v23 = vld [vmem:[%s5644_s1 + $0xa8] sm:$0xff]  ;;  %v79_v24 = vld [vmem:[%s5644_s1 + $0xb8] sm:$0xf]  ;;  %v3413_v26 = vpack.c.bf16 %v74_v22, %v72_v21  ;;  %v76_v28 = vld [vmem:[%s5644_s1 + $0xa0] sm:$0xff] }
   0x7   :  { %v3415_v27 = vpack.c.bf16 %v79_v24, %v77_v23  ;;  %v78_v29 = vld [vmem:[%s5644_s1 + $0xb0] sm:$0xf]  ;;  %v81_v30 = vld [vmem:[%s5644_s1 + $0xc8] sm:$0xff]  ;;  %v83_v31 = vld [vmem:[%s5644_s1 + $0xd8] sm:$0xff] }
   0x8   :  { %v4073_v25 = vsel %vm137_vm0, %v726_v16, %v727_v19  ;;  %v3418_v32 = vpack.c.bf16 %v78_v29, %v76_v28  ;;  %v3421_v33 = vpack.c.bf16 %v83_v31, %v81_v30  ;;  %v65_v34 = vld [vmem:[%s5644_s1 + $0x48] sm:$0xff]  ;;  %v4100_v35 = vld [vmem:[%s5643_s0 + $0x10] sm:$0xff]  ;;  %v67_v36 = vld [vmem:[%s5644_s1 + $0x58] sm:$0xff] }
   0x9   :  { %3410 = vmatpush1.bf16.msk.msra.mxu0 %vm4030_vm2, %v3408_v15  ;;  %v64_v37 = vld [vmem:[%s5644_s1 + $0x40] sm:$0xff]  ;;  %v3391_v38 = vpack.c.bf16 %v67_v36, %v65_v34  ;;  %v66_v39 = vld [vmem:[%s5644_s1 + $0x50] sm:$0xff]  ;;  %v69_v40 = vld [vmem:[%s5644_s1 + $0x68] sm:$0xff] }
   0xa   :  { %3412 = vmatprep.subr.bf16.mxu0 %v3411_v20  ;;  %v71_v41 = vld [vmem:[%s5644_s1 + $0x78] sm:$0xf]  ;;  %v3393_v42 = vpack.c.bf16 %v66_v39, %v64_v37  ;;  %v68_v44 = vld [vmem:[%s5644_s1 + $0x60] sm:$0xff]  ;;  %v70_v45 = vld [vmem:[%s5644_s1 + $0x70] sm:$0xf] }
   0xb   :  { %v3395_v43 = vpack.c.bf16 %v71_v41, %v69_v40 }
   0xc   :  { %3168 = vmatmul.mubr.msk.f32.vlgmr.msra.gmra.mrb[0].mxu0 %vm120_vm3, %v4043_v13 }
   0xd   :  { %349 = vmatprep.mubr.f32.mxu0 %v3926_v7  ;;  %3414 = vmatpush1.bf16.msra.mxu0 %v3413_v26 }
   0xe   :  { %3417 = vmatprep.subr.msk.bf16.mxu0 %vm4030_vm2, %v3415_v27 }
  0x10   :  { %3169 = vmatmul.mubr.msk.f32.gmra.mrb[2].mxu0 %vm120_vm3, %v4052_v17 }
  0x11   :  { %355 = vmatprep.mubr.f32.mxu0 %v3926_v7  ;;  %3420 = vmatpush1.bf16.msk.msra.mxu0 %vm4030_vm2, %v3418_v32 }
  0x12   :  { %19 = vsyncpa [#allocation3], 0  ;;  %v4131_v46 = vld [vmem:[%s5643_s0 + $0x18] sm:$0xff]  ;;  %v4136_v47 = vld [vmem:[%s5643_s0 + $0x20] sm:$0xff]  ;;  %3422 = vmatprep.subr.bf16.mxu0 %v3421_v33  ;;  %3392 = vmatprep.subr.bf16.mxu1 %v3391_v38  ;;  %v105_v48 = vrot.slane %v4043_v13, 1  ;;  %v729_v49 = vrot.slane %v4100_v35, 4  ;;  %v3398_v51 = vpack.c.bf16 %v70_v45, %v68_v44 }
  0x13   :  { %v4143_v50 = vld [vmem:[%s5643_s0 + $0x28] sm:$0xff]  ;;  %3394 = vmatpush1.bf16.msra.mxu1 %v3393_v42  ;;  %v106_v52 = vrot.slane %v4052_v17, 1  ;;  %v731_v53 = vrot.slane %v4131_v46, 4  ;;  %v733_v54 = vrot.slane %v4136_v47, 4  ;;  %vm104_vm4 = vcmask 1046528   ;;  %v4160_v57 = vld [vmem:[%s5643_s0 + $0x30] sm:$0xff] }
  0x14   :  { %3170 = vmatmul.mubr.msk.f32.gmra.mrb[4].mxu0 %vm120_vm3, %v4100_v35  ;;  %3397 = vmatprep.subr.msk.bf16.mxu1 %vm4030_vm2, %v3395_v43  ;;  %v4153_v55 = vsel %vm137_vm0, %v727_v19, %v729_v49  ;;  %v735_v56 = vrot.slane %v4143_v50, 4  ;;  %v4171_v60 = vld [vmem:[%s5643_s0 + $0x38] sm:$0xff]  ;;  %v737_v62 = vrot.slane %v4160_v57, 4  ;;  %v108_v0 = vrot.slane %v4100_v35, 1  ;;  %v80_v15 = vld [vmem:[%s5644_s1 + $0xc0] sm:$0xff]  ;;  %v82_v16 = vld [vmem:[%s5644_s1 + $0xd0] sm:$0xff] }
  0x15   :  { %361 = vmatprep.mubr.f32.mxu0 %v3926_v7  ;;  %v4163_v58 = vsel %vm137_vm0, %v729_v49, %v731_v53  ;;  %v4166_v59 = vsel %vm137_vm0, %v731_v53, %v733_v54  ;;  %v107_v63 = vsel %vm104_vm4, %v105_v48, %v106_v52  ;;  %v739_v1 = vrot.slane %v4171_v60, 4  ;;  %v85_v18 = vld [vmem:[%s5644_s1 + $0xe8] sm:$0xff]  ;;  %v87_v19 = vld [vmem:[%s5644_s1 + $0xf8] sm:$0xf]  ;;  %v84_v27 = vld [vmem:[%s5644_s1 + $0xe0] sm:$0xff]  ;;  %s3929_s15 = smov 122  }
  0x16   :  { %v4174_v61 = vsel %vm137_vm0, %v733_v54, %v735_v56  ;;  %v4185_v2 = vsel %vm137_vm0, %v735_v56, %v737_v62  ;;  %v109_v4 = vsel %vm104_vm4, %v106_v52, %v108_v0  ;;  %v110_v5 = vrot.slane %v4131_v46, 1  ;;  %v86_v28 = vld [vmem:[%s5644_s1 + $0xf0] sm:$0xf]  ;;  %v89_v29 = vld [vmem:[%s5644_s1 + $0x108] sm:$0xff]  ;;  %v91_v30 = vld [vmem:[%s5644_s1 + $0x118] sm:$0xff]  ;;  %s3930_s25 = smov 112  }
  0x17   :  { %3400 = vmatpush1.bf16.msk.msra.mxu1 %vm4030_vm2, %v3398_v51  ;;  %v4191_v3 = vsel %vm137_vm0, %v737_v62, %v739_v1  ;;  %v112_v8 = vrot.slane %v4136_v47, 1  ;;  %v114_v11 = vrot.slane %v4143_v50, 1  ;;  %v393_v12 = vrot.slane %v4043_v13, 2  ;;  %v88_v53 = vld [vmem:[%s5644_s1 + $0x100] sm:$0xff]  ;;  %v90_v54 = vld [vmem:[%s5644_s1 + $0x110] sm:$0xff]  ;;  %v93_v56 = vld [vmem:[%s5644_s1 + $0x128] sm:$0xff] }
  0x18   :  { %3171 = vmatmul.mubr.msk.f32.gmra.mrb[6].mxu0 %vm120_vm3, %v4131_v46  ;;  %v111_v6 = vsel %vm104_vm4, %v108_v0, %v110_v5  ;;  %v394_v14 = vrot.slane %v4052_v17, 2  ;;  %vm392_vm5 = vcmask 1045504   ;;  %v116_v21 = vrot.slane %v4160_v57, 1 }
  0x19   :  { %367 = vmatprep.mubr.f32.mxu0 %v3926_v7  ;;  %v113_v10 = vsel %vm104_vm4, %v110_v5, %v112_v8  ;;  %v115_v20 = vsel %vm104_vm4, %v112_v8, %v114_v11  ;;  %v396_v23 = vrot.slane %v4100_v35, 2  ;;  %v3423_v24 = vpack.c.bf16 %v82_v16, %v80_v15  ;;  %v94_v5 = vld [vmem:[%s5644_s1 + $0x130] sm:$0xf] }
  0x1a   :  { %3158 = vmatmul.mubr.msk.f32.vlgmr.msra.gmra.mrb[0].mxu1 %vm120_vm3, %v107_v63  ;;  %v395_v22 = vsel %vm392_vm5, %v393_v12, %v394_v14  ;;  %v3425_v26 = vpack.c.bf16 %v87_v19, %v85_v18  ;;  %v117_v31 = vsel %vm104_vm4, %v114_v11, %v116_v21  ;;  %v118_v32 = vrot.slane %v4171_v60, 1  ;;  %v1113_v16 = vld [vmem:[%s5647_s4 + $0x30] sm:$0xff]  ;;  %v1114_v18 = vld [vmem:[%s5647_s4 + $0x38] sm:$0xff] }
  0x1b   :  { %214 = vmatprep.mubr.f32.mxu1 %v3926_v7  ;;  %v397_v33 = vsel %vm392_vm5, %v394_v14, %v396_v23  ;;  %v398_v34 = vrot.slane %v4131_v46, 2  ;;  %v3428_v36 = vpack.c.bf16 %v86_v28, %v84_v27  ;;  %v3431_v37 = vpack.c.bf16 %v91_v30, %v89_v29  ;;  %v1117_v28 = vld [vmem:[%s5647_s4 + $0x50] sm:$0xff]  ;;  %v1118_v29 = vld [vmem:[%s5647_s4 + $0x58] sm:$0xff] }
  0x1c   :  { %3172 = vmatmul.mubr.msk.f32.gmra.mrb[8].mxu0 %vm120_vm3, %v4136_v47  ;;  %v119_v38 = vsel %vm104_vm4, %v116_v21, %v118_v32  ;;  %v400_v40 = vrot.slane %v4136_v47, 2  ;;  %v402_v42 = vrot.slane %v4143_v50, 2  ;;  %v404_v44 = vrot.slane %v4160_v57, 2 }
  0x1d   :  { %373 = vmatprep.mubr.f32.mxu0 %v3926_v7  ;;  %v399_v39 = vsel %vm392_vm5, %v396_v23, %v398_v34  ;;  %v406_v48 = vrot.slane %v4171_v60, 2  ;;  %v560_v51 = vrot.slane %v4043_v13, 3  ;;  %v561_v52 = vrot.slane %v4052_v17, 3  ;;  %v95_v13 = vld [vmem:[%s5644_s1 + $0x138] sm:$0xf]  ;;  %v1116_v23 = vld [vmem:[%s5647_s4 + $0x48] sm:$0xff] }
  0x1e   :  { %3159 = vmatmul.mubr.msk.f32.gmra.mrb[2].mxu1 %vm120_vm3, %v109_v4  ;;  %v401_v41 = vsel %vm392_vm5, %v398_v34, %v400_v40  ;;  %v403_v43 = vsel %vm392_vm5, %v400_v40, %v402_v42  ;;  %v405_v45 = vsel %vm392_vm5, %v402_v42, %v404_v44  ;;  %vm559_vm6 = vcmask 1044480   ;;  %v92_v4 = vld [vmem:[%s5644_s1 + $0x120] sm:$0xff]  ;;  %v1120_v34 = vld [vmem:[%s5647_s4 + $0x68] sm:$0xff] }
  0x1f   :  { %220 = vmatprep.mubr.f32.mxu1 %v3926_v7  ;;  %v407_v49 = vsel %vm392_vm5, %v404_v44, %v406_v48  ;;  %v562_v17 = vsel %vm559_vm6, %v560_v51, %v561_v52  ;;  %v563_v62 = vrot.slane %v4100_v35, 3  ;;  %v3433_v63 = vpack.c.bf16 %v90_v54, %v88_v53  ;;  %v1122_v53 = vld [vmem:[%s5647_s4 + $0x78] sm:$0xff] }
  0x20   :  { %3173 = vmatmul.mubr.msk.f32.gmra.mrb[10].mxu0 %vm120_vm3, %v4143_v50  ;;  %v3435_v0 = vpack.c.bf16 %v95_v13, %v93_v56  ;;  %v565_v8 = vrot.slane %v4131_v46, 3  ;;  %v3438_v35 = vpack.c.bf16 %v94_v5, %v92_v4  ;;  %v567_v11 = vrot.slane %v4136_v47, 3  ;;  %v892_v13 = vld [vmem:[%s5645_s2] sm:$0x3] }
  0x21   :  { %379 = vmatprep.mubr.f32.mxu0 %v3926_v7  ;;  %v569_v12 = vrot.slane %v4143_v50, 3  ;;  %v571_v15 = vrot.slane %v4160_v57, 3  ;;  %v573_v47 = vrot.slane %v4171_v60, 3  ;;  %v3451_v21 = vpack.c.bf16 %v1114_v18, %v1113_v16 }
  0x22   :  { %3160 = vmatmul.mubr.msk.f32.gmra.mrb[4].mxu1 %vm120_vm3, %v111_v6  ;;  %v564_v6 = vsel %vm559_vm6, %v561_v52, %v563_v62  ;;  %v568_v46 = vsel %vm559_vm6, %v565_v8, %v567_v11  ;;  %v1121_v52 = vld [vmem:[%s5647_s4 + $0x70] sm:$0xff]  ;;  %vm1153_vm7 = vcmask 1041408   ;;  %vm984_vm8 = vcmask 998400  }
  0x23   :  { %226 = vmatprep.mubr.f32.mxu1 %v3926_v7  ;;  %v570_v14 = vsel %vm559_vm6, %v567_v11, %v569_v12  ;;  %v572_v9 = vsel %vm559_vm6, %v569_v12, %v571_v15  ;;  %v574_v50 = vsel %vm559_vm6, %v571_v15, %v573_v47  ;;  %v3463_v54 = vpack.c.bf16 %v1122_v53, %v1121_v52  ;;  %v1125_v11 = vld [vmem:[%s5647_s4 + $0x90] sm:$0xff] }
  0x24   :  { %3174 = vmatmul.mubr.msk.f32.gmra.mrb[12].mxu0 %vm120_vm3, %v4160_v57  ;;  %v1109_v57 = vld [vmem:[%s5647_s4 + $0x10] sm:$0xff]  ;;  %vm1128_vm9 = vcmask 277504   ;;  %vm1262_vm10 = vcmask 482304   ;;  %vm1275_vm11 = vcmask 1042432   ;;  %vm1485_vm13 = vcmask 687104  }
  0x25   :  { %385 = vmatprep.mubr.f32.mxu0 %v3926_v7  ;;  %vm3484_vm12 = vmpackc.low %vm1275_vm11, %vm3927_vm1  ;;  %vm2042_vm14 = vcmask 916480   ;;  %vm2182_vm15 = vcmask 187392   ;;  %vm2263_vm1 = vcmask 130048  }
  0x26   :  { %3161 = vmatmul.mubr.msk.f32.gmra.mrb[6].mxu1 %vm120_vm3, %v113_v10  ;;  %v566_v10 = vsel %vm559_vm6, %v563_v62, %v565_v8  ;;  %v1123_v62 = vld [vmem:[%s5647_s4 + $0x80] sm:$0xff] }
  0x27   :  { %232 = vmatprep.mubr.f32.mxu1 %v3926_v7 }
  0x28   :  { %3175 = vmatmul.mubr.msk.f32.gmra.mrb[14].mxu0 %vm120_vm3, %v4171_v60  ;;  %v1110_v60 = vld [vmem:[%s5647_s4 + $0x18] sm:$0xff] }
  0x29   :  { %494 = vmatprep.mubr.f32.mxu0 %v3926_v7 }
  0x2a   :  { %3162 = vmatmul.mubr.msk.f32.gmra.mrb[8].mxu1 %vm120_vm3, %v115_v20 }
  0x2b   :  { %238 = vmatprep.mubr.f32.mxu1 %v3926_v7 }
  0x2c   :  { %3178 = vmatmul.mubr.msk.f32.vlgmr.msra.gmra.mrb[0].mxu0 %vm120_vm3, %v395_v22  ;;  %v1115_v22 = vld [vmem:[%s5647_s4 + $0x40] sm:$0xff] }
  0x2d   :  { %500 = vmatprep.mubr.f32.mxu0 %v3926_v7  ;;  %3424 = vmatpush1.bf16.msra.mxu0 %v3423_v24  ;;  %v3454_v27 = vpack.c.bf16 %v1116_v23, %v1115_v22 }
  0x2e   :  { %3427 = vmatprep.subr.msk.bf16.mxu0 %vm4030_vm2, %v3425_v26  ;;  %3163 = vmatmul.mubr.msk.f32.gmra.mrb[10].mxu1 %vm120_vm3, %v117_v31 }
  0x2f   :  { %244 = vmatprep.mubr.f32.mxu1 %v3926_v7 }
  0x30   :  { %3179 = vmatmul.mubr.msk.f32.gmra.mrb[2].mxu0 %vm120_vm3, %v397_v33  ;;  %v1119_v33 = vld [vmem:[%s5647_s4 + $0x60] sm:$0xff] }
  0x31   :  { %506 = vmatprep.mubr.f32.mxu0 %v3926_v7  ;;  %3430 = vmatpush1.bf16.msk.msra.mxu0 %vm4030_vm2, %v3428_v36 }
  0x32   :  { %3432 = vmatprep.subr.bf16.mxu0 %v3431_v37  ;;  %3164 = vmatmul.mubr.msk.f32.gmra.mrb[12].mxu1 %vm120_vm3, %v119_v38  ;;  %v3460_v38 = vpack.c.bf16 %v1120_v34, %v1119_v33 }
  0x33   :  { %250 = vmatprep.mubr.f32.mxu1 %v3926_v7 }
  0x34   :  { %3180 = vmatmul.mubr.msk.f32.gmra.mrb[4].mxu0 %vm120_vm3, %v399_v39 }
  0x35   :  { %512 = vmatprep.mubr.f32.mxu0 %v3926_v7 }
  0x36   :  { %3165 = vmatmul.mubr.msk.f32.gmra.mrb[14].mxu1 %vm120_vm3, %v118_v32  ;;  %v3457_v32 = vpack.c.bf16 %v1118_v29, %v1117_v28 }
  0x38   :  { %3181 = vmatmul.mubr.msk.f32.gmra.mrb[6].mxu0 %vm120_vm3, %v401_v41 }
  0x39   :  { %518 = vmatprep.mubr.f32.mxu0 %v3926_v7 }
  0x3c   :  { %3182 = vmatmul.mubr.msk.f32.gmra.mrb[8].mxu0 %vm120_vm3, %v403_v43 }
  0x3d   :  { %524 = vmatprep.mubr.f32.mxu0 %v3926_v7 }
  0x40   :  { %3183 = vmatmul.mubr.msk.f32.gmra.mrb[10].mxu0 %vm120_vm3, %v405_v45 }
  0x41   :  { %530 = vmatprep.mubr.f32.mxu0 %v3926_v7 }
  0x44   :  { %3184 = vmatmul.mubr.msk.f32.gmra.mrb[12].mxu0 %vm120_vm3, %v407_v49  ;;  %v894_v49 = vlaneseq }
  0x45   :  { %536 = vmatprep.mubr.f32.mxu0 %v3926_v7 }
  0x46   :  { %v4441_v51 = vshrl.u32 %v894_v49, 7 }
  0x48   :  { %3185 = vmatmul.mubr.msk.f32.gmra.mrb[14].mxu0 %vm120_vm3, %v406_v48  ;;  %v900_v56 = vsub.s32 1, %v4441_v51 }
  0x49   :  { %661 = vmatprep.mubr.f32.mxu0 %v3926_v7 }
  0x4a   :  { %v4463_v5 = vrot.slane %v892_v13, %v900_v56 }
  0x4c   :  { %3188 = vmatmul.mubr.msk.f32.vlgmr.msra.gmra.mrb[0].mxu0 %vm120_vm3, %v562_v17  ;;  %v896_v17 = vsub.s32 0, %v4441_v51 }
  0x4d   :  { %667 = vmatprep.mubr.f32.mxu0 %v3926_v7  ;;  %3434 = vmatpush1.bf16.msra.mxu0 %v3433_v63  ;;  %v1124_v63 = vld [vmem:[%s5647_s4 + $0x88] sm:$0xff] }
  0x4e   :  { %3437 = vmatprep.subr.msk.bf16.mxu0 %vm4030_vm2, %v3435_v0  ;;  %v3466_v0 = vpack.c.bf16 %v1124_v63, %v1123_v62  ;;  %v4467_v8 = vrot.slane %v892_v13, %v896_v17 }
  0x50   :  { %3189 = vmatmul.mubr.msk.f32.gmra.mrb[2].mxu0 %vm120_vm3, %v564_v6 }
  0x51   :  { %673 = vmatprep.mubr.f32.mxu0 %v3926_v7  ;;  %3440 = vmatpush1.bf16.msk.msra.mxu0 %vm4030_vm2, %v3438_v35  ;;  %vm3931_vm2 = vmmov 0  }
  0x54   :  { %3190 = vmatmul.mubr.msk.f32.gmra.mrb[4].mxu0 %vm120_vm3, %v566_v10 }
  0x55   :  { %679 = vmatprep.mubr.f32.mxu0 %v3926_v7 }
  0x58   :  { %3191 = vmatmul.mubr.msk.f32.gmra.mrb[6].mxu0 %vm120_vm3, %v568_v46  ;;  %v1126_v46 = vld [vmem:[%s5647_s4 + $0x98] sm:$0xff] }
  0x59   :  { %685 = vmatprep.mubr.f32.mxu0 %v3926_v7  ;;  %v3469_v12 = vpack.c.bf16 %v1126_v46, %v1125_v11 }
  0x5c   :  { %3192 = vmatmul.mubr.msk.f32.gmra.mrb[8].mxu0 %vm120_vm3, %v570_v14 }
  0x5d   :  { %691 = vmatprep.mubr.f32.mxu0 %v3926_v7 }
  0x60   :  { %3193 = vmatmul.mubr.msk.f32.gmra.mrb[10].mxu0 %vm120_vm3, %v572_v9 }
  0x61   :  { %697 = vmatprep.mubr.f32.mxu0 %v3926_v7 }
  0x64   :  { %3194 = vmatmul.mubr.msk.f32.gmra.mrb[12].mxu0 %vm120_vm3, %v574_v50 }
  0x65   :  { %703 = vmatprep.mubr.f32.mxu0 %v3926_v7 }
  0x68   :  { %3195 = vmatmul.mubr.msk.f32.gmra.mrb[14].mxu0 %vm120_vm3, %v573_v47 }
  0x69   :  { %827 = vmatprep.mubr.f32.mxu0 %v3926_v7 }
  0x6c   :  { %3198 = vmatmul.mubr.msk.f32.vlgmr.msra.gmra.mrb[0].mxu0 %vm120_vm3, %v4073_v25  ;;  %v1107_v25 = vld [vmem:[%s5647_s4] sm:$0xff] }
  0x6d   :  { %833 = vmatprep.mubr.f32.mxu0 %v3926_v7 }
  0x70   :  { %3199 = vmatmul.mubr.msk.f32.gmra.mrb[2].mxu0 %vm120_vm3, %v4153_v55  ;;  %v1108_v55 = vld [vmem:[%s5647_s4 + $0x8] sm:$0xff] }
  0x71   :  { %839 = vmatprep.mubr.f32.mxu0 %v3926_v7 }
  0x74   :  { %3200 = vmatmul.mubr.msk.f32.gmra.mrb[4].mxu0 %vm120_vm3, %v4163_v58  ;;  %v3928_v58 = vmov 0.0|0.0  }
  0x75   :  { %845 = vmatprep.mubr.f32.mxu0 %v3926_v7  ;;  %3441 = vmatprep.subr.bf16.mxu1 %v3928_v58 }
  0x78   :  { %3201 = vmatmul.mubr.msk.f32.gmra.mrb[6].mxu0 %vm120_vm3, %v4166_v59  ;;  %v3442_v59 = vpack.c.bf16 %v1108_v55, %v1107_v25 }
  0x79   :  { %851 = vmatprep.mubr.f32.mxu0 %v3926_v7 }
  0x7a   :  { %3443 = vmatpush1.bf16.msra.mxu1 %v3442_v59 }
  0x7b   :  { %3444 = vmatprep.subr.bf16.mxu1 %v3928_v58 }
  0x7c   :  { %3202 = vmatmul.mubr.msk.f32.gmra.mrb[8].mxu0 %vm120_vm3, %v4174_v61  ;;  %v3445_v61 = vpack.c.bf16 %v1110_v60, %v1109_v57 }
  0x7d   :  { %857 = vmatprep.mubr.f32.mxu0 %v3926_v7 }
  0x7e   :  { %3446 = vmatpush1.bf16.msra.mxu1 %v3445_v61  ;;  %v1127_v61 = vld [vmem:[%s5647_s4 + $0xa0] sm:$0x3] }
  0x7f   :  { %3447 = vmatprep.subr.bf16.mxu1 %v3928_v58 }
  0x80   :  { %3203 = vmatmul.mubr.msk.f32.gmra.mrb[10].mxu0 %vm120_vm3, %v4185_v2  ;;  %v1112_v2 = vld [vmem:[%s5647_s4 + $0x28] sm:$0xff] }
  0x81   :  { %863 = vmatprep.mubr.f32.mxu0 %v3926_v7 }
  0x84   :  { %3204 = vmatmul.mubr.msk.f32.gmra.mrb[12].mxu0 %vm120_vm3, %v4191_v3 }
  0x85   :  { %869 = vmatprep.mubr.f32.mxu0 %v3926_v7 }
  0x88   :  { %3205 = vmatmul.mubr.msk.f32.gmra.mrb[14].mxu0 %vm120_vm3, %v739_v1  ;;  %v1111_v1 = vld [vmem:[%s5647_s4 + $0x20] sm:$0xff]  ;;  %vm2959_vm3 = vcmask 982016  }
  0x89   :  { %v3448_v3 = vpack.c.bf16 %v1112_v2, %v1111_v1 }
  0x8b   :  { %3449 = vmatpush1.bf16.msra.mxu1 %v3448_v3 }
  0x8c   :  { %3450 = vmatprep.subr.bf16.mxu1 %v3928_v58 }
  0x8f   :  { %3452 = vmatpush1.bf16.msra.mxu1 %v3451_v21 }
  0x90   :  { %3453 = vmatprep.subr.bf16.mxu1 %v3928_v58 }
  0x93   :  { %3455 = vmatpush1.bf16.msra.mxu1 %v3454_v27 }
  0x94   :  { %3456 = vmatprep.subr.bf16.mxu1 %v3928_v58 }
  0x97   :  { %3458 = vmatpush1.bf16.msra.mxu1 %v3457_v32 }
  0x98   :  { %3459 = vmatprep.subr.bf16.mxu1 %v3928_v58 }
  0x9b   :  { %3461 = vmatpush1.bf16.msra.mxu1 %v3460_v38 }
  0x9c   :  { %3462 = vmatprep.subr.bf16.mxu1 %v3928_v58 }
  0x9f   :  { %3464 = vmatpush1.bf16.msra.mxu1 %v3463_v54 }
  0xa0   :  { %3465 = vmatprep.subr.bf16.mxu1 %v3928_v58 }
  0xa3   :  { %3467 = vmatpush1.bf16.msra.mxu1 %v3466_v0 }
  0xa4   :  { %3468 = vmatprep.subr.bf16.mxu1 %v3928_v58 }
  0xa7   :  { %3470 = vmatpush1.bf16.msra.mxu1 %v3469_v12 }
  0xa8   :  { %1197 = vmatprep.subr.mxu1 %v3926_v7 }
  0xab   :  { %3206 = vmatpush1.msk.msra.mxu1 %vm1153_vm7, %v1127_v61 }
  0xed   :  { %v210_v19 = vpop.f32.mrb[0].mxu1 }
  0xee   :  { %v212_v20 = vpop.f32.mrb[1].mxu1 }
  0xf1   :  { %v216_v24 = vpop.f32.mrb[2].mxu1 }
  0xf2   :  { %v218_v26 = vpop.f32.mrb[3].mxu1 }
  0xf5   :  { %v4408_v30 = vpop.f32.mrb[4].mxu1 }
  0xf6   :  { %v4410_v31 = vpop.f32.mrb[5].mxu1 }
  0xf9   :  { %v4419_v36 = vpop.f32.mrb[6].mxu1 }
  0xfa   :  { %v4421_v37 = vpop.f32.mrb[7].mxu1 }
  0xfd   :  { %v4424_v39 = vpop.f32.mrb[8].mxu1 }
  0xfe   :  { %v4426_v40 = vpop.f32.mrb[9].mxu1 }
 0x101   :  { %v4429_v41 = vpop.f32.mrb[10].mxu1 }
 0x102   :  { %v4431_v42 = vpop.f32.mrb[11].mxu1 }
 0x105   :  { %v4433_v43 = vpop.f32.mrb[12].mxu1 }
 0x106   :  { %v4435_v44 = vpop.f32.mrb[13].mxu1 }
 0x109   :  { %v4437_v45 = vpop.f32.mrb[14].mxu1 }
 0x10a   :  { %v4439_v48 = vpop.f32.mrb[15].mxu1 }
 0x13f   :  { %v829_v4 = vpop.f32.mrb[0].mxu0 }
 0x140   :  { %v3780_v6 = vadd.f32 %v829_v4, %v210_v19  ;;  %v831_v35 = vpop.f32.mrb[1].mxu0 }
 0x141   :  { %v3781_v10 = vadd.f32 %v831_v35, %v212_v20 }
 0x142   :  { %v4480_v9 = vadd.f32 %v3780_v6, %v4467_v8 }
 0x143   :  { %v835_v14 = vpop.f32.mrb[2].mxu0  ;;  %v4477_v15 = vadd.f32 %v3781_v10, %v4463_v5 }
 0x144   :  { %v3782_v47 = vadd.f32 %v835_v14, %v216_v24  ;;  %v837_v50 = vpop.f32.mrb[3].mxu0  ;;  %v920_v1 = vmax.f32 %v4480_v9, 0.0 }
 0x145   :  { %v3783_v25 = vadd.f32 %v837_v50, %v218_v26  ;;  %v921_v55 = vmax.f32 %v4477_v15, 0.0 }
 0x146   :  { %v4485_v57 = vadd.f32 %v3782_v47, %v4467_v8 }
 0x147   :  { %v841_v59 = vpop.f32.mrb[4].mxu0  ;;  %954 = vrot.lane.b32.xlu0 %v921_v55, %s3929_s15  ;;  %v4491_v60 = vadd.f32 %v3783_v25, %v4463_v5 }
 0x148   :  { %v922_v2 = vmax.f32 %v4485_v57, 0.0  ;;  %v3784_v3 = vadd.f32 %v841_v59, %v4408_v30  ;;  %v843_v16 = vpop.f32.mrb[5].mxu0 }
 0x149   :  { %v3785_v18 = vadd.f32 %v843_v16, %v4410_v31  ;;  %v923_v19 = vmax.f32 %v4491_v60, 0.0 }
 0x14a   :  { %v4502_v20 = vadd.f32 %v3784_v3, %v4467_v8  ;;  %v3883_v21 = vpack.i.bf16 %v922_v2, %v920_v1 }
 0x14b   :  { %v4509_v22 = vadd.f32 %v3785_v18, %v4463_v5  ;;  %v847_v23 = vpop.f32.mrb[6].mxu0  ;;  %958 = vrot.lane.b32.xlu1 %v923_v19, %s3929_s15 }
 0x14c   :  { %v924_v24 = vmax.f32 %v4502_v20, 0.0  ;;  %v3786_v26 = vadd.f32 %v847_v23, %v4419_v36  ;;  %v849_v27 = vpop.f32.mrb[7].mxu0  ;;  %3884 = vrot.lane.b32.xlu0 %v3883_v21, %s3929_s15 }
 0x14d   :  { %v925_v28 = vmax.f32 %v4509_v22, 0.0  ;;  %v3787_v29 = vadd.f32 %v849_v27, %v4421_v37 }
 0x14e   :  { %v4520_v30 = vadd.f32 %v3786_v26, %v4467_v8 }
 0x14f   :  { %v4523_v31 = vadd.f32 %v3787_v29, %v4463_v5  ;;  %v853_v32 = vpop.f32.mrb[8].mxu0  ;;  %960 = vrot.lane.b32.xlu1 %v924_v24, %s3929_s15 }
 0x150   :  { %v926_v33 = vmax.f32 %v4520_v30, 0.0  ;;  %v3788_v34 = vadd.f32 %v853_v32, %v4424_v39  ;;  %v855_v36 = vpop.f32.mrb[9].mxu0  ;;  %962 = vrot.lane.b32.xlu0 %v925_v28, %s3929_s15 }
 0x151   :  { %v927_v37 = vmax.f32 %v4523_v31, 0.0  ;;  %v3789_v38 = vadd.f32 %v855_v36, %v4426_v40 }
 0x152   :  { %v4536_v49 = vadd.f32 %v3788_v34, %v4467_v8 }
 0x153   :  { %v4539_v52 = vadd.f32 %v3789_v38, %v4463_v5  ;;  %v859_v53 = vpop.f32.mrb[10].mxu0  ;;  %964 = vrot.lane.b32.xlu1 %v926_v33, %s3929_s15 }
 0x154   :  { %v928_v39 = vmax.f32 %v4536_v49, 0.0  ;;  %v3790_v54 = vadd.f32 %v859_v53, %v4429_v41  ;;  %v861_v13 = vpop.f32.mrb[11].mxu0  ;;  %966 = vrot.lane.b32.xlu0 %v927_v37, %s3929_s15 }
 0x155   :  { %v929_v40 = vmax.f32 %v4539_v52, 0.0  ;;  %v3791_v62 = vadd.f32 %v861_v13, %v4431_v42 }
 0x156   :  { %v4552_v63 = vadd.f32 %v3790_v54, %v4467_v8 }
 0x157   :  { %v4555_v0 = vadd.f32 %v3791_v62, %v4463_v5  ;;  %v865_v4 = vpop.f32.mrb[12].mxu0  ;;  %968 = vrot.lane.b32.xlu1 %v928_v39, %s3929_s15 }
 0x158   :  { %v930_v41 = vmax.f32 %v4552_v63, 0.0  ;;  %v3792_v6 = vadd.f32 %v865_v4, %v4433_v43  ;;  %v867_v35 = vpop.f32.mrb[13].mxu0  ;;  %970 = vrot.lane.b32.xlu0 %v929_v40, %s3929_s15 }
 0x159   :  { %v931_v42 = vmax.f32 %v4555_v0, 0.0  ;;  %v3793_v10 = vadd.f32 %v867_v35, %v4435_v44 }
 0x15a   :  { %v4568_v11 = vadd.f32 %v3792_v6, %v4467_v8 }
 0x15b   :  { %v4571_v46 = vadd.f32 %v3793_v10, %v4463_v5  ;;  %v871_v12 = vpop.f32.mrb[14].mxu0  ;;  %972 = vrot.lane.b32.xlu1 %v930_v41, %s3929_s15 }
 0x15c   :  { %v932_v43 = vmax.f32 %v4568_v11, 0.0  ;;  %v3794_v14 = vadd.f32 %v871_v12, %v4437_v45  ;;  %v873_v47 = vpop.f32.mrb[15].mxu0  ;;  %974 = vrot.lane.b32.xlu0 %v931_v42, %s3929_s15 }
 0x15d   :  { %v933_v44 = vmax.f32 %v4571_v46, 0.0  ;;  %v3795_v50 = vadd.f32 %v873_v47, %v4439_v48 }
 0x15e   :  { %v4584_v25 = vadd.f32 %v3794_v14, %v4467_v8 }
 0x15f   :  { %v4587_v59 = vadd.f32 %v3795_v50, %v4463_v5  ;;  %976 = vrot.lane.b32.xlu1 %v932_v43, %s3929_s15 }
 0x160   :  { %v934_v45 = vmax.f32 %v4584_v25, 0.0  ;;  %978 = vrot.lane.b32.xlu0 %v933_v44, %s3929_s15 }
 0x161   :  { %v935_v61 = vmax.f32 %v4587_v59, 0.0 }
 0x163   :  { %980 = vrot.lane.b32.xlu1 %v934_v45, %s3929_s15 }
 0x164   :  { %982 = vrot.lane.b32.xlu0 %v935_v61, %s3929_s15 }
 0x1b9   :  { %v955_v48 = vpop.permute.xlu0 %954 }
 0x1ba   :  { %v1010_v5 = vmax.f32 %v921_v55, %v955_v48 }
 0x1bc   :  { %v1044_v23 = vrot.slane %v1010_v5, 1 }
 0x1bd   :  { %v959_v8 = vpop.permute.xlu1 %958 }
 0x1be   :  { %v1012_v3 = vmax.f32 %v923_v19, %v959_v8  ;;  %v3885_v16 = vpop.permute.xlu0 %3884 }
 0x1bf   :  { %v3887_v18 = vunpack.i.h.bf16 %v3885_v16  ;;  %v3886_v21 = vunpack.i.l.bf16 %v3885_v16 }
 0x1c0   :  { %v1045_v26 = vrot.slane %v1012_v3, 1 }
 0x1c1   :  { %v985_v27 = vsel %vm984_vm8, %v3886_v21, %v955_v48  ;;  %v986_v29 = vsel %vm984_vm8, %v3887_v18, %v959_v8  ;;  %v961_v32 = vpop.permute.xlu1 %960 }
 0x1c2   :  { %v1046_v34 = vsel %vm104_vm4, %v1044_v23, %v1045_v26  ;;  %v1009_v15 = vmax.f32 %v920_v1, %v985_v27  ;;  %v1011_v55 = vmax.f32 %v922_v2, %v986_v29  ;;  %v963_v60 = vpop.permute.xlu0 %962 }
 0x1c3   :  { %v987_v19 = vsel %vm984_vm8, %v961_v32, %v963_v60  ;;  %v1014_v36 = vmax.f32 %v925_v28, %v963_v60  ;;  %v1088_v38 = vmax.f32 %v1010_v5, %v1046_v34 }
 0x1c4   :  { %v1041_v53 = vrot.slane %v1009_v15, 1  ;;  %v1042_v54 = vrot.slane %v1011_v55, 1  ;;  %v1013_v13 = vmax.f32 %v924_v24, %v987_v19 }
 0x1c5   :  { %v1049_v62 = vrot.slane %v1014_v36, 1  ;;  %3207 = vmatprep.mubr.msk.f32.mxu1 %vm1128_vm9, %v1088_v38  ;;  %v965_v9 = vpop.permute.xlu1 %964 }
 0x1c6   :  { %v1043_v57 = vsel %vm104_vm4, %v1041_v53, %v1042_v54  ;;  %v1047_v1 = vrot.slane %v1013_v13, 1  ;;  %v967_v2 = vpop.permute.xlu0 %966 }
 0x1c7   :  { %v1087_v4 = vmax.f32 %v1009_v15, %v1043_v57  ;;  %v1050_v6 = vsel %vm104_vm4, %v1045_v26, %v1049_v62  ;;  %v988_v22 = vsel %vm984_vm8, %v965_v9, %v967_v2  ;;  %v1016_v28 = vmax.f32 %v927_v37, %v967_v2 }
 0x1c8   :  { %v1015_v20 = vmax.f32 %v926_v33, %v988_v22  ;;  %v1090_v24 = vmax.f32 %v1012_v3, %v1050_v6  ;;  %v1048_v35 = vsel %vm104_vm4, %v1042_v54, %v1047_v1  ;;  %v1387_v22 = vld [vmem:[%s5648_s5 + $0xb8] sm:$0xff] }
 0x1c9   :  { %v1053_v10 = vrot.slane %v1016_v28, 1  ;;  %1222 = vmatmul.mubr.f32.vlgmr.msra.gmra.mrb[16].mxu1 %v1087_v4  ;;  %v969_v12 = vpop.permute.xlu1 %968  ;;  %v1089_v37 = vmax.f32 %v1011_v55, %v1048_v35  ;;  %v1388_v35 = vld [vmem:[%s5648_s5 + $0xc0] sm:$0xff] }
 0x1ca   :  { %v1051_v14 = vrot.slane %v1015_v20, 1  ;;  %3208 = vmatprep.mubr.msk.f32.mxu1 %vm1128_vm9, %v1090_v24  ;;  %v971_v47 = vpop.permute.xlu0 %970 }
 0x1cb   :  { %v1054_v50 = vsel %vm104_vm4, %v1049_v62, %v1053_v10  ;;  %v989_v48 = vsel %vm984_vm8, %v969_v12, %v971_v47  ;;  %v1018_v31 = vmax.f32 %v929_v40, %v971_v47  ;;  %v1393_v12 = vld [vmem:[%s5648_s5 + $0xe8] sm:$0xff] }
 0x1cc   :  { %v1017_v30 = vmax.f32 %v928_v39, %v989_v48  ;;  %v1092_v33 = vmax.f32 %v1014_v36, %v1054_v50  ;;  %v1052_v5 = vsel %vm104_vm4, %v1047_v1, %v1051_v14  ;;  %v1390_v50 = vld [vmem:[%s5648_s5 + $0xd0] sm:$0xff]  ;;  %v1392_v48 = vld [vmem:[%s5648_s5 + $0xe0] sm:$0xff] }
 0x1cd   :  { %v1057_v8 = vrot.slane %v1018_v31, 1  ;;  %1227 = vmatmul.mubr.f32.gmra.mrb[18].mxu1 %v1089_v37  ;;  %v973_v3 = vpop.permute.xlu1 %972  ;;  %v1091_v40 = vmax.f32 %v1013_v13, %v1052_v5  ;;  %v1397_v37 = vld [vmem:[%s5648_s5 + $0x108] sm:$0xff]  ;;  %v1394_v5 = vld [vmem:[%s5648_s5 + $0xf0] sm:$0xff] }
 0x1ce   :  { %v1055_v16 = vrot.slane %v1017_v30, 1  ;;  %3209 = vmatprep.mubr.msk.f32.mxu1 %vm1128_vm9, %v1092_v33  ;;  %v975_v18 = vpop.permute.xlu0 %974 }
 0x1cf   :  { %v1058_v21 = vsel %vm104_vm4, %v1053_v10, %v1057_v8  ;;  %v990_v23 = vsel %vm984_vm8, %v973_v3, %v975_v18  ;;  %v1020_v52 = vmax.f32 %v931_v42, %v975_v18  ;;  %v1391_v10 = vld [vmem:[%s5648_s5 + $0xd8] sm:$0xff] }
 0x1d0   :  { %v1019_v49 = vmax.f32 %v930_v41, %v990_v23  ;;  %v1094_v39 = vmax.f32 %v1016_v28, %v1058_v21  ;;  %v1056_v26 = vsel %vm104_vm4, %v1051_v14, %v1055_v16  ;;  %v1389_v28 = vld [vmem:[%s5648_s5 + $0xc8] sm:$0xff]  ;;  %v3493_v47 = vpack.c.bf16 %v1393_v12, %v1391_v10  ;;  %v1399_v3 = vld [vmem:[%s5648_s5 + $0x118] sm:$0xff]  ;;  %v1398_v23 = vld [vmem:[%s5648_s5 + $0x110] sm:$0xff] }
 0x1d1   :  { %v1061_v27 = vrot.slane %v1020_v52, 1  ;;  %1232 = vmatmul.mubr.f32.gmra.mrb[20].mxu1 %v1091_v40  ;;  %v977_v29 = vpop.permute.xlu1 %976  ;;  %v1093_v42 = vmax.f32 %v1015_v20, %v1056_v26  ;;  %v1386_v20 = vld [vmem:[%s5648_s5 + $0xb0] sm:$0xff]  ;;  %v3489_v24 = vpack.c.bf16 %v1389_v28, %v1387_v22  ;;  %v1403_v40 = vld [vmem:[%s5648_s5 + $0x138] sm:$0xff]  ;;  %v1369_v28 = vld [vmem:[%s5648_s5 + $0x28] sm:$0xff] }
 0x1d2   :  { %v1059_v32 = vrot.slane %v1019_v49, 1  ;;  %3210 = vmatprep.mubr.msk.f32.mxu1 %vm1128_vm9, %v1094_v39  ;;  %v979_v34 = vpop.permute.xlu0 %978  ;;  %v3491_v14 = vpack.c.bf16 %v1388_v35, %v1386_v20  ;;  %v1366_v22 = vld [vmem:[%s5648_s5 + $0x10] sm:$0xff]  ;;  %v1371_v35 = vld [vmem:[%s5648_s5 + $0x38] sm:$0xff]  ;;  %v1368_v10 = vld [vmem:[%s5648_s5 + $0x20] sm:$0xff] }
 0x1d3   :  { %v1062_v15 = vsel %vm104_vm4, %v1057_v8, %v1061_v27  ;;  %v991_v55 = vsel %vm984_vm8, %v977_v29, %v979_v34  ;;  %v1022_v0 = vmax.f32 %v933_v44, %v979_v34  ;;  %3490 = vmatprep.subr.bf16.mxu1 %v3489_v24  ;;  %v1396_v8 = vld [vmem:[%s5648_s5 + $0x100] sm:$0xff]  ;;  %v1370_v12 = vld [vmem:[%s5648_s5 + $0x30] sm:$0xff] }
 0x1d4   :  { %v1021_v63 = vmax.f32 %v932_v43, %v991_v55  ;;  %v1096_v41 = vmax.f32 %v1018_v31, %v1062_v15  ;;  %v1060_v60 = vsel %vm104_vm4, %v1055_v16, %v1059_v32  ;;  %v1395_v31 = vld [vmem:[%s5648_s5 + $0xf8] sm:$0xff]  ;;  %3492 = vmatpush1.bf16.msra.mxu1 %v3491_v14  ;;  %v1401_v16 = vld [vmem:[%s5648_s5 + $0x128] sm:$0xff]  ;;  %v3499_v18 = vpack.c.bf16 %v1396_v8, %v1394_v5  ;;  %v1404_v29 = vld [vmem:[%s5648_s5 + $0x140] sm:$0xff] }
 0x1d5   :  { %v1065_v19 = vrot.slane %v1022_v0, 1  ;;  %1237 = vmatmul.mubr.f32.gmra.mrb[22].mxu1 %v1093_v42  ;;  %v981_v36 = vpop.permute.xlu1 %980  ;;  %v1095_v44 = vmax.f32 %v1017_v30, %v1060_v60  ;;  %v3495_v30 = vpack.c.bf16 %v1392_v48, %v1390_v50  ;;  %3494 = vmatprep.subr.bf16.mxu1 %v3493_v47  ;;  %v3497_v33 = vpack.c.bf16 %v1397_v37, %v1395_v31 }
 0x1d6   :  { %v1063_v38 = vrot.slane %v1021_v63, 1  ;;  %3211 = vmatprep.mubr.msk.f32.mxu1 %vm1128_vm9, %v1096_v41  ;;  %v983_v53 = vpop.permute.xlu0 %982  ;;  %v3501_v21 = vpack.c.bf16 %v1401_v16, %v1399_v3  ;;  %v3513_v8 = vpack.c.bf16 %v1371_v35, %v1369_v28  ;;  %v3515_v3 = vpack.c.bf16 %v1370_v12, %v1368_v10  ;;  %v1411_v28 = vld [vmem:[%s5648_s5 + $0x178] sm:$0xff]  ;;  %v1410_v35 = vld [vmem:[%s5648_s5 + $0x170] sm:$0xff]  ;;  %v1413_v10 = vld [vmem:[%s5648_s5 + $0x188] sm:$0xff] }
 0x1d7   :  { %v1066_v54 = vsel %vm104_vm4, %v1061_v27, %v1065_v19  ;;  %v992_v13 = vsel %vm984_vm8, %v981_v36, %v983_v53  ;;  %v1024_v46 = vmax.f32 %v935_v61, %v983_v53  ;;  %v1103_v61 = vld [vmem:[%s5646_s3] sm:$0xff]  ;;  %v1402_v27 = vld [vmem:[%s5648_s5 + $0x130] sm:$0xff]  ;;  %v1415_v12 = vld [vmem:[%s5648_s5 + $0x198] sm:$0xff] }
 0x1d8   :  { %v1023_v11 = vmax.f32 %v934_v45, %v992_v13  ;;  %v1098_v43 = vmax.f32 %v1020_v52, %v1066_v54  ;;  %v1064_v62 = vsel %vm104_vm4, %v1059_v32, %v1063_v38  ;;  %3327 = vmatprep.mubr.msk.f32.mxu0 %vm1262_vm10, %v1103_v61  ;;  %3496 = vmatpush1.bf16.msra.mxu1 %v3495_v30  ;;  %v1400_v52 = vld [vmem:[%s5648_s5 + $0x120] sm:$0xff] }
 0x1d9   :  { %v1069_v9 = vrot.slane %v1024_v46, 1  ;;  %1242 = vmatmul.mubr.f32.gmra.mrb[24].mxu1 %v1095_v44  ;;  %v1097_v2 = vmax.f32 %v1019_v49, %v1064_v62  ;;  %3498 = vmatprep.subr.bf16.mxu1 %v3497_v33  ;;  %v1405_v49 = vld [vmem:[%s5648_s5 + $0x148] sm:$0xff]  ;;  %v3503_v39 = vpack.c.bf16 %v1400_v52, %v1398_v23  ;;  %v3507_v32 = vpack.c.bf16 %v1404_v29, %v1402_v27  ;;  %v1364_v61 = vld [vmem:[%s5648_s5] sm:$0xff]  ;;  %v1375_v23 = vld [vmem:[%s5648_s5 + $0x58] sm:$0xff] }
 0x1da   :  { %v1067_v57 = vrot.slane %v1023_v11, 1  ;;  %3212 = vmatprep.mubr.msk.f32.mxu1 %vm1128_vm9, %v1098_v43  ;;  %v3505_v26 = vpack.c.bf16 %v1405_v49, %v1403_v40  ;;  %v3511_v24 = vpack.c.bf16 %v1366_v22, %v1364_v61  ;;  %v1385_v61 = vld [vmem:[%s5648_s5 + $0xa8] sm:$0xf] }
 0x1db   :  { %v1070_v1 = vsel %vm104_vm4, %v1065_v19, %v1069_v9  ;;  %v1102_v25 = vmax.f32 %v1024_v46, %v1069_v9  ;;  %v1409_v22 = vld [vmem:[%s5648_s5 + $0x168] sm:$0xff] }
 0x1dc   :  { %v1100_v4 = vmax.f32 %v1022_v0, %v1070_v1  ;;  %v1068_v6 = vsel %vm104_vm4, %v1063_v38, %v1067_v57  ;;  %v1101_v45 = vmax.f32 %v1023_v11, %v1067_v57  ;;  %3500 = vmatpush1.bf16.msra.mxu1 %v3499_v18  ;;  %v1104_v57 = vld [vmem:[%s5646_s3 + $0x8] sm:$0xff]  ;;  %v1105_v1 = vld [vmem:[%s5646_s3 + $0x10] sm:$0xff] }
 0x1dd   :  { %1247 = vmatmul.mubr.f32.gmra.mrb[26].mxu1 %v1097_v2  ;;  %v1099_v59 = vmax.f32 %v1021_v63, %v1068_v6  ;;  %3502 = vmatprep.subr.bf16.mxu1 %v3501_v21  ;;  %v1106_v2 = vld [vmem:[%s5646_s3 + $0x18] sm:$0xf]  ;;  %v1365_v6 = vld [vmem:[%s5648_s5 + $0x8] sm:$0xff] }
 0x1de   :  { %3213 = vmatprep.mubr.msk.f32.mxu1 %vm1128_vm9, %v1100_v4  ;;  %v1407_v4 = vld [vmem:[%s5648_s5 + $0x158] sm:$0xf]  ;;  %v1373_v21 = vld [vmem:[%s5648_s5 + $0x48] sm:$0xff] }
 0x1e0   :  { %3504 = vmatpush1.bf16.msra.mxu1 %v3503_v39 }
 0x1e1   :  { %1252 = vmatmul.mubr.f32.gmra.mrb[28].mxu1 %v1099_v59  ;;  %3506 = vmatprep.subr.bf16.mxu1 %v3505_v26  ;;  %v1367_v59 = vld [vmem:[%s5648_s5 + $0x18] sm:$0xff] }
 0x1e2   :  { %3214 = vmatprep.mubr.msk.f32.mxu1 %vm1128_vm9, %v1102_v25  ;;  %v1406_v25 = vld [vmem:[%s5648_s5 + $0x150] sm:$0xf] }
 0x1e4   :  { %3508 = vmatpush1.bf16.msra.mxu1 %v3507_v32 }
 0x1e5   :  { %1257 = vmatmul.mubr.f32.gmra.mrb[30].mxu1 %v1101_v45  ;;  %3220 = vmatprep.subr.msk.mxu1 %vm137_vm0, %v1407_v4  ;;  %v3509_v45 = vpack.c.bf16 %v1367_v59, %v1365_v6  ;;  %v1380_v59 = vld [vmem:[%s5648_s5 + $0x80] sm:$0xff] }
 0x1e6   :  { %1562 = vmatprep.mubr.f32.mxu1 %v3926_v7 }
 0x1e8   :  { %3221 = vmatpush1.msk.msra.mxu1 %vm137_vm0, %v1406_v25  ;;  %v1382_v25 = vld [vmem:[%s5648_s5 + $0x90] sm:$0xff] }
 0x1e9   :  { %3510 = vmatprep.subr.bf16.mxu1 %v3509_v45  ;;  %v3527_v45 = vpack.c.bf16 %v1382_v25, %v1380_v59 }
 0x29c   :  { %v1223_v34 = vpop.f32.mrb[16].mxu1 }
 0x29d   :  { %v1225_v15 = vpop.f32.mrb[17].mxu1 }
 0x2a0   :  { %v1228_v55 = vpop.f32.mrb[18].mxu1 }
 0x2a1   :  { %v3471_v0 = vpack.c.bf16 %v1228_v55, %v1223_v34  ;;  %v1230_v42 = vpop.f32.mrb[19].mxu1 }
 0x2a2   :  { %v3517_v42 = vpack.c.bf16 %v1375_v23, %v1373_v21  ;;  %v1421_v21 = vld [vmem:[%s5648_s5 + $0x1c8] sm:$0xff] }
 0x2a3   :  { %3472 = vmatprep.subr.bf16.mxu0 %v3471_v0 }
 0x2a4   :  { %v1233_v63 = vpop.f32.mrb[20].mxu1  ;;  %3474 = vmatpush3.bf16.msra.mxu0 %v3471_v0 }
 0x2a5   :  { %v1235_v41 = vpop.f32.mrb[21].mxu1 }
 0x2a6   :  { %v1374_v41 = vld [vmem:[%s5648_s5 + $0x50] sm:$0xff] }
 0x2a8   :  { %v1238_v60 = vpop.f32.mrb[22].mxu1 }
 0x2a9   :  { %v3475_v19 = vpack.c.bf16 %v1238_v60, %v1233_v63  ;;  %v1240_v36 = vpop.f32.mrb[23].mxu1  ;;  %v1372_v63 = vld [vmem:[%s5648_s5 + $0x40] sm:$0xff] }
 0x2aa   :  { %v1379_v36 = vld [vmem:[%s5648_s5 + $0x78] sm:$0xff] }
 0x2ab   :  { %3476 = vmatprep.subr.bf16.mxu0 %v3475_v19 }
 0x2ac   :  { %v1243_v38 = vpop.f32.mrb[24].mxu1  ;;  %3478 = vmatpush3.bf16.msra.mxu0 %v3475_v19  ;;  %v1377_v19 = vld [vmem:[%s5648_s5 + $0x68] sm:$0xff] }
 0x2ad   :  { %v1245_v53 = vpop.f32.mrb[25].mxu1 }
 0x2b0   :  { %v1248_v54 = vpop.f32.mrb[26].mxu1 }
 0x2b1   :  { %v3479_v13 = vpack.c.bf16 %v1248_v54, %v1243_v38  ;;  %v1250_v46 = vpop.f32.mrb[27].mxu1 }
 0x2b3   :  { %3480 = vmatprep.subr.bf16.mxu0 %v3479_v13 }
 0x2b4   :  { %v1253_v44 = vpop.f32.mrb[28].mxu1  ;;  %3482 = vmatpush3.bf16.msra.mxu0 %v3479_v13 }
 0x2b5   :  { %v1255_v11 = vpop.f32.mrb[29].mxu1 }
 0x2b8   :  { %v1258_v43 = vpop.f32.mrb[30].mxu1 }
 0x2b9   :  { %v3483_v62 = vpack.c.bf16 %v1258_v43, %v1253_v44  ;;  %v1260_v9 = vpop.f32.mrb[31].mxu1  ;;  %v3519_v43 = vpack.c.bf16 %v1374_v41, %v1372_v63  ;;  %v1431_v63 = vld [vmem:[%s5648_s5 + $0x218] sm:$0xff]  ;;  %v1433_v41 = vld [vmem:[%s5648_s5 + $0x228] sm:$0xff] }
 0x2ba   :  { %v1376_v9 = vld [vmem:[%s5648_s5 + $0x60] sm:$0xff] }
 0x2bb   :  { %3485 = vmatprep.subr.msk.bf16.mxu0 %vm3484_vm12, %v3483_v62 }
 0x2bc   :  { %3488 = vmatpush3.bf16.msk.msra.mxu0 %vm3484_vm12, %v3483_v62  ;;  %v3521_v62 = vpack.c.bf16 %v1379_v36, %v1377_v19  ;;  %v1432_v19 = vld [vmem:[%s5648_s5 + $0x220] sm:$0xff]  ;;  %v1435_v36 = vld [vmem:[%s5648_s5 + $0x238] sm:$0xff] }
 0x2bf   :  { %3328 = vmatmul.mubr.msk.f32.vlgmr.msra.gmra.mrb[16].mxu0 %vm1262_vm10, %v1104_v57  ;;  %v1378_v57 = vld [vmem:[%s5648_s5 + $0x70] sm:$0xff] }
 0x2c0   :  { %3330 = vmatprep.mubr.msk.f32.mxu0 %vm1262_vm10, %v1105_v1  ;;  %v1381_v1 = vld [vmem:[%s5648_s5 + $0x88] sm:$0xff]  ;;  %v3523_v4 = vpack.c.bf16 %v1378_v57, %v1376_v9 }
 0x2c3   :  { %3331 = vmatmul.mubr.msk.f32.gmra.mrb[18].mxu0 %vm1262_vm10, %v1106_v2  ;;  %v1383_v2 = vld [vmem:[%s5648_s5 + $0x98] sm:$0xff] }
 0x2c4   :  { %2256 = vmatprep.mubr.f32.mxu0 %v3926_v7  ;;  %v3525_v6 = vpack.c.bf16 %v1383_v2, %v1381_v1  ;;  %v1434_v1 = vld [vmem:[%s5648_s5 + $0x230] sm:$0xff]  ;;  %v1436_v2 = vld [vmem:[%s5648_s5 + $0x240] sm:$0xff] }
 0x2c5   :  { %v3555_v59 = vpack.c.bf16 %v1436_v2, %v1434_v1  ;;  %v2093_v1 = vld [vmem:[%s5651_s8 + $0x10] sm:$0xff] }
 0x392   :  { %v4767_v20 = vpop.f32.mrb[16].mxu0 }
 0x393   :  { %v1479_v14 = vrot.slane %v4767_v20, 1  ;;  %v1677_v47 = vrot.slane %v4767_v20, 2  ;;  %v1785_v50 = vrot.slane %v4767_v20, 3  ;;  %v1893_v48 = vrot.slane %v4767_v20, 4  ;;  %v4782_v31 = vpop.f32.mrb[17].mxu0 }
 0x394   :  { %v1478_v37 = vrot.slane %v4782_v31, 1  ;;  %v1676_v30 = vrot.slane %v4782_v31, 2  ;;  %v1784_v33 = vrot.slane %v4782_v31, 3  ;;  %v1892_v5 = vrot.slane %v4782_v31, 4 }
 0x396   :  { %v3332_v16 = vpop.f32.mrb[18].mxu0  ;;  %v1480_v18 = vsel %vm104_vm4, %v1478_v37, %v1479_v14  ;;  %v4796_v52 = vsel %vm392_vm5, %v1676_v30, %v1677_v47  ;;  %v4799_v40 = vsel %vm559_vm6, %v1784_v33, %v1785_v50  ;;  %v4802_v49 = vsel %vm137_vm0, %v1892_v5, %v1893_v48  ;;  %v1412_v37 = vld [vmem:[%s5648_s5 + $0x180] sm:$0xff]  ;;  %v1414_v30 = vld [vmem:[%s5648_s5 + $0x190] sm:$0xff]  ;;  %v1417_v33 = vld [vmem:[%s5648_s5 + $0x1a8] sm:$0xff] }
 0x397   :  { %v1483_v39 = vrot.slane %v3332_v16, 1  ;;  %v1681_v26 = vrot.slane %v3332_v16, 2  ;;  %v1789_v27 = vrot.slane %v3332_v16, 3  ;;  %v1897_v29 = vrot.slane %v3332_v16, 4  ;;  %v4804_v32 = vpop.f32.mrb[19].mxu0  ;;  %3222 = vmatmul.mubr.msk.f32.vlgmr.msra.gmra.mrb[32].mxu1 %vm1485_vm13, %v1480_v18  ;;  %v1419_v5 = vld [vmem:[%s5648_s5 + $0x1b8] sm:$0xff] }
 0x398   :  { %3512 = vmatpush1.bf16.msra.mxu1 %v3511_v24  ;;  %1568 = vmatprep.mubr.f32.mxu1 %v3926_v7  ;;  %v1481_v34 = vrot.slane %v4804_v32, 1  ;;  %v1679_v15 = vrot.slane %v4804_v32, 2  ;;  %v1787_v55 = vrot.slane %v4804_v32, 3  ;;  %v1895_v0 = vrot.slane %v4804_v32, 4  ;;  %v1408_v24 = vld [vmem:[%s5648_s5 + $0x160] sm:$0xff]  ;;  %v1418_v18 = vld [vmem:[%s5648_s5 + $0x1b0] sm:$0xff] }
 0x399   :  { %3514 = vmatprep.subr.bf16.mxu1 %v3513_v8  ;;  %v3535_v8 = vpack.c.bf16 %v1414_v30, %v1412_v37  ;;  %v1416_v16 = vld [vmem:[%s5648_s5 + $0x1a0] sm:$0xff]  ;;  %v1453_v30 = vld [vmem:[%s5648_s5 + $0x2c8] sm:$0xff] }
 0x39a   :  { %v1482_v60 = vsel %vm104_vm4, %v1479_v14, %v1481_v34  ;;  %v1484_v38 = vsel %vm104_vm4, %v1481_v34, %v1483_v39  ;;  %v4827_v53 = vsel %vm392_vm5, %v1677_v47, %v1679_v15  ;;  %v4830_v54 = vsel %vm392_vm5, %v1679_v15, %v1681_v26  ;;  %v1384_v14 = vld [vmem:[%s5648_s5 + $0xa0] sm:$0xf] }
 0x39b   :  { %3223 = vmatmul.mubr.msk.f32.gmra.mrb[34].mxu1 %vm1485_vm13, %v1482_v60  ;;  %v4834_v13 = vsel %vm559_vm6, %v1785_v50, %v1787_v55  ;;  %v4837_v46 = vsel %vm559_vm6, %v1787_v55, %v1789_v27  ;;  %v4840_v44 = vsel %vm137_vm0, %v1893_v48, %v1895_v0  ;;  %v4843_v11 = vsel %vm137_vm0, %v1895_v0, %v1897_v29  ;;  %v1420_v26 = vld [vmem:[%s5648_s5 + $0x1c0] sm:$0xff]  ;;  %v1422_v27 = vld [vmem:[%s5648_s5 + $0x1d0] sm:$0xff]  ;;  %v1425_v29 = vld [vmem:[%s5648_s5 + $0x1e8] sm:$0xff] }
 0x39c   :  { %3516 = vmatpush1.bf16.msra.mxu1 %v3515_v3  ;;  %1574 = vmatprep.mubr.f32.mxu1 %v3926_v7  ;;  %v3529_v47 = vpack.c.bf16 %v1411_v28, %v1409_v22  ;;  %v3531_v50 = vpack.c.bf16 %v1410_v35, %v1408_v24  ;;  %v3533_v48 = vpack.c.bf16 %v1415_v12, %v1413_v10  ;;  %v1424_v55 = vld [vmem:[%s5648_s5 + $0x1e0] sm:$0xff]  ;;  %v1426_v0 = vld [vmem:[%s5648_s5 + $0x1f0] sm:$0xff]  ;;  %v1443_v22 = vld [vmem:[%s5648_s5 + $0x278] sm:$0xff] }
 0x39d   :  { %3518 = vmatprep.subr.bf16.mxu1 %v3517_v42  ;;  %v3537_v3 = vpack.c.bf16 %v1419_v5, %v1417_v33  ;;  %v3539_v23 = vpack.c.bf16 %v1418_v18, %v1416_v16  ;;  %v3543_v34 = vpack.c.bf16 %v1422_v27, %v1420_v26  ;;  %v3547_v42 = vpack.c.bf16 %v1426_v0, %v1424_v55  ;;  %v1430_v60 = vld [vmem:[%s5648_s5 + $0x210] sm:$0xff]  ;;  %v1444_v10 = vld [vmem:[%s5648_s5 + $0x280] sm:$0xff]  ;;  %v1447_v12 = vld [vmem:[%s5648_s5 + $0x298] sm:$0xff] }
 0x39e   :  { %v3551_v9 = vpack.c.bf16 %v1432_v19, %v1430_v60  ;;  %v1442_v35 = vld [vmem:[%s5648_s5 + $0x270] sm:$0xff]  ;;  %v1455_v33 = vld [vmem:[%s5648_s5 + $0x2d8] sm:$0xff]  ;;  %v1452_v5 = vld [vmem:[%s5648_s5 + $0x2c0] sm:$0xff] }
 0x39f   :  { %3224 = vmatmul.mubr.msk.f32.gmra.mrb[36].mxu1 %vm1485_vm13, %v1484_v38  ;;  %v1437_v38 = vld [vmem:[%s5648_s5 + $0x248] sm:$0xff]  ;;  %v1459_v16 = vld [vmem:[%s5648_s5 + $0x2f8] sm:$0xff]  ;;  %v1450_v18 = vld [vmem:[%s5648_s5 + $0x2b0] sm:$0xf] }
 0x3a0   :  { %3520 = vmatpush1.bf16.msra.mxu1 %v3519_v43  ;;  %1657 = vmatprep.mubr.f32.mxu1 %v3926_v7  ;;  %v1428_v43 = vld [vmem:[%s5648_s5 + $0x200] sm:$0xf]  ;;  %v3553_v57 = vpack.c.bf16 %v1437_v38, %v1435_v36  ;;  %v1458_v26 = vld [vmem:[%s5648_s5 + $0x2f0] sm:$0xff]  ;;  %v1461_v27 = vld [vmem:[%s5648_s5 + $0x308] sm:$0xff] }
 0x3a1   :  { %3522 = vmatprep.subr.bf16.mxu1 %v3521_v62  ;;  %v3549_v62 = vpack.c.bf16 %v1433_v41, %v1431_v63  ;;  %v1462_v55 = vld [vmem:[%s5648_s5 + $0x310] sm:$0xff]  ;;  %v1465_v0 = vld [vmem:[%s5648_s5 + $0x328] sm:$0xff]  ;;  %v1464_v63 = vld [vmem:[%s5648_s5 + $0x320] sm:$0xff] }
 0x3a2   :  { %v1466_v41 = vld [vmem:[%s5648_s5 + $0x330] sm:$0xff]  ;;  %v1469_v60 = vld [vmem:[%s5648_s5 + $0x348] sm:$0xff]  ;;  %v1468_v38 = vld [vmem:[%s5648_s5 + $0x340] sm:$0xff] }
 0x3a3   :  { %v3583_v19 = vpack.c.bf16 %v1466_v41, %v1464_v63 }
 0x3a4   :  { %3524 = vmatpush1.bf16.msra.mxu1 %v3523_v4  ;;  %v1439_v4 = vld [vmem:[%s5648_s5 + $0x258] sm:$0xff] }
 0x3a5   :  { %3526 = vmatprep.subr.bf16.mxu1 %v3525_v6  ;;  %v1441_v6 = vld [vmem:[%s5648_s5 + $0x268] sm:$0xff] }
 0x3a6   :  { %v3557_v25 = vpack.c.bf16 %v1441_v6, %v1439_v4  ;;  %v2096_v6 = vld [vmem:[%s5651_s8 + $0x28] sm:$0xff] }
 0x3a8   :  { %3528 = vmatpush1.bf16.msra.mxu1 %v3527_v45  ;;  %v1438_v45 = vld [vmem:[%s5648_s5 + $0x250] sm:$0xff] }
 0x3a9   :  { %3225 = vmatprep.subr.msk.mxu1 %vm137_vm0, %v1385_v61  ;;  %v1440_v61 = vld [vmem:[%s5648_s5 + $0x260] sm:$0xff] }
 0x3aa   :  { %v3559_v28 = vpack.c.bf16 %v1440_v61, %v1438_v45  ;;  %v2098_v45 = vld [vmem:[%s5651_s8 + $0x38] sm:$0xff] }
 0x3ac   :  { %3226 = vmatpush1.msk.msra.mxu1 %vm137_vm0, %v1384_v14  ;;  %v3563_v14 = vpack.c.bf16 %v1444_v10, %v1442_v35  ;;  %v2101_v35 = vld [vmem:[%s5651_s8 + $0x50] sm:$0xff]  ;;  %v2102_v10 = vld [vmem:[%s5651_s8 + $0x58] sm:$0xff] }
 0x3ad   :  { %3227 = vmatmul.mubr.msk.f32.vlgmr.msra.gmra.mrb[32].mxu1 %vm1485_vm13, %v4782_v31  ;;  %3530 = vmatprep.subr.bf16.mxu1 %v3529_v47  ;;  %v1423_v31 = vld [vmem:[%s5648_s5 + $0x1d8] sm:$0xff] }
 0x3ae   :  { %3532 = vmatpush1.bf16.msra.mxu1 %v3531_v50  ;;  %1663 = vmatprep.mubr.f32.mxu1 %v3926_v7  ;;  %v3541_v39 = vpack.c.bf16 %v1423_v31, %v1421_v21  ;;  %v1446_v50 = vld [vmem:[%s5648_s5 + $0x290] sm:$0xff]  ;;  %v3569_v21 = vpack.c.bf16 %v1455_v33, %v1453_v30 }
 0x3af   :  { %3534 = vmatprep.subr.bf16.mxu1 %v3533_v48  ;;  %v1448_v48 = vld [vmem:[%s5648_s5 + $0x2a0] sm:$0xff] }
 0x3b0   :  { %v3567_v37 = vpack.c.bf16 %v1448_v48, %v1446_v50  ;;  %v2103_v50 = vld [vmem:[%s5651_s8 + $0x60] sm:$0xff]  ;;  %v2104_v48 = vld [vmem:[%s5651_s8 + $0x68] sm:$0xff] }
 0x3b1   :  { %3228 = vmatmul.mubr.msk.f32.gmra.mrb[34].mxu1 %vm1485_vm13, %v4767_v20  ;;  %v1427_v20 = vld [vmem:[%s5648_s5 + $0x1f8] sm:$0xff]  ;;  %v3612_v30 = vpack.c.bf16 %v2104_v48, %v2103_v50  ;;  %v2086_v48 = vld [vmem:[%s5650_s7] sm:$0x3] }
 0x3b2   :  { %3536 = vmatpush1.bf16.msra.mxu1 %v3535_v8  ;;  %1669 = vmatprep.mubr.f32.mxu1 %v3926_v7  ;;  %v3545_v15 = vpack.c.bf16 %v1427_v20, %v1425_v29  ;;  %v1454_v8 = vld [vmem:[%s5648_s5 + $0x2d0] sm:$0xff]  ;;  %v1463_v29 = vld [vmem:[%s5648_s5 + $0x318] sm:$0xff] }
 0x3b3   :  { %3538 = vmatprep.subr.bf16.mxu1 %v3537_v3  ;;  %v1457_v3 = vld [vmem:[%s5648_s5 + $0x2e8] sm:$0xff]  ;;  %v3571_v31 = vpack.c.bf16 %v1454_v8, %v1452_v5  ;;  %v2105_v5 = vld [vmem:[%s5651_s8 + $0x70] sm:$0xff]  ;;  %v2106_v8 = vld [vmem:[%s5651_s8 + $0x78] sm:$0xff] }
 0x3b5   :  { %3229 = vmatmul.mubr.msk.f32.gmra.mrb[36].mxu1 %vm1485_vm13, %v4804_v32  ;;  %v1429_v32 = vld [vmem:[%s5648_s5 + $0x208] sm:$0xf] }
 0x3b6   :  { %3540 = vmatpush1.bf16.msra.mxu1 %v3539_v23  ;;  %1759 = vmatprep.mubr.f32.mxu1 %v3926_v7  ;;  %v3573_v23 = vpack.c.bf16 %v1459_v16, %v1457_v3 }
 0x3b7   :  { %3542 = vmatprep.subr.bf16.mxu1 %v3541_v39  ;;  %v1456_v39 = vld [vmem:[%s5648_s5 + $0x2e0] sm:$0xff] }
 0x3b8   :  { %v3575_v20 = vpack.c.bf16 %v1458_v26, %v1456_v39 }
 0x3ba   :  { %3544 = vmatpush1.bf16.msra.mxu1 %v3543_v34  ;;  %v3577_v34 = vpack.c.bf16 %v1463_v29, %v1461_v27  ;;  %v2107_v27 = vld [vmem:[%s5651_s8 + $0x80] sm:$0xff]  ;;  %v2108_v29 = vld [vmem:[%s5651_s8 + $0x88] sm:$0xff] }
 0x3bb   :  { %3546 = vmatprep.subr.bf16.mxu1 %v3545_v15  ;;  %v1460_v15 = vld [vmem:[%s5648_s5 + $0x300] sm:$0xff] }
 0x3be   :  { %3548 = vmatpush1.bf16.msra.mxu1 %v3547_v42  ;;  %v3579_v42 = vpack.c.bf16 %v1462_v55, %v1460_v15  ;;  %v3618_v15 = vpack.c.bf16 %v2108_v29, %v2107_v27  ;;  %v2121_v29 = vld [vmem:[%s5651_s8 + $0xf0] sm:$0xff] }
 0x3bf   :  { %3230 = vmatprep.subr.msk.mxu1 %vm137_vm0, %v1429_v32 }
 0x3c2   :  { %3231 = vmatpush1.msk.msra.mxu1 %vm137_vm0, %v1428_v43  ;;  %v1470_v43 = vld [vmem:[%s5648_s5 + $0x350] sm:$0xff] }
 0x3c3   :  { %3232 = vmatmul.mubr.msk.f32.vlgmr.msra.gmra.mrb[32].mxu1 %vm1485_vm13, %v4796_v52  ;;  %3550 = vmatprep.subr.bf16.mxu1 %v3549_v62  ;;  %v1445_v52 = vld [vmem:[%s5648_s5 + $0x288] sm:$0xff]  ;;  %v3587_v62 = vpack.c.bf16 %v1470_v43, %v1468_v38 }
 0x3c4   :  { %3552 = vmatpush1.bf16.msra.mxu1 %v3551_v9  ;;  %1765 = vmatprep.mubr.f32.mxu1 %v3926_v7  ;;  %v3561_v24 = vpack.c.bf16 %v1445_v52, %v1443_v22  ;;  %v1472_v9 = vld [vmem:[%s5648_s5 + $0x360] sm:$0xf]  ;;  %v2100_v52 = vld [vmem:[%s5651_s8 + $0x48] sm:$0xff] }
 0x3c5   :  { %3554 = vmatprep.subr.bf16.mxu1 %v3553_v57  ;;  %v2091_v57 = vld [vmem:[%s5651_s8] sm:$0xff] }
 0x3c6   :  { %v2099_v22 = vld [vmem:[%s5651_s8 + $0x40] sm:$0xff] }
 0x3c7   :  { %3233 = vmatmul.mubr.msk.f32.gmra.mrb[34].mxu1 %vm1485_vm13, %v4827_v53  ;;  %v1449_v53 = vld [vmem:[%s5648_s5 + $0x2a8] sm:$0xff] }
 0x3c8   :  { %3556 = vmatpush1.bf16.msra.mxu1 %v3555_v59  ;;  %1771 = vmatprep.mubr.f32.mxu1 %v3926_v7  ;;  %v3565_v47 = vpack.c.bf16 %v1449_v53, %v1447_v12  ;;  %v3609_v53 = vpack.c.bf16 %v2102_v10, %v2101_v35 }
 0x3c9   :  { %3558 = vmatprep.subr.bf16.mxu1 %v3557_v25  ;;  %v2097_v25 = vld [vmem:[%s5651_s8 + $0x30] sm:$0xff] }
 0x3ca   :  { %v3603_v61 = vpack.c.bf16 %v2098_v45, %v2097_v25 }
 0x3cb   :  { %3234 = vmatmul.mubr.msk.f32.gmra.mrb[36].mxu1 %vm1485_vm13, %v4830_v54  ;;  %v1451_v54 = vld [vmem:[%s5648_s5 + $0x2b8] sm:$0xf] }
 0x3cc   :  { %3560 = vmatpush1.bf16.msra.mxu1 %v3559_v28  ;;  %1867 = vmatprep.mubr.f32.mxu1 %v3926_v7  ;;  %v3606_v28 = vpack.c.bf16 %v2100_v52, %v2099_v22 }
 0x3cd   :  { %3562 = vmatprep.subr.bf16.mxu1 %v3561_v24  ;;  %v2000_v24 = vld [vmem:[%s5649_s6] sm:$0x3] }
 0x3ce   :  { %v2005_v12 = vrot.slane %v2000_v24, %v896_v17 }
 0x3d0   :  { %3564 = vmatpush1.bf16.msra.mxu1 %v3563_v14  ;;  %v2009_v14 = vrot.slane %v2000_v24, %v900_v56 }
 0x3d1   :  { %3566 = vmatprep.subr.bf16.mxu1 %v3565_v47 }
 0x3d4   :  { %3568 = vmatpush1.bf16.msra.mxu1 %v3567_v37 }
 0x3d5   :  { %3235 = vmatprep.subr.msk.mxu1 %vm137_vm0, %v1451_v54 }
 0x3d8   :  { %3236 = vmatpush1.msk.msra.mxu1 %vm137_vm0, %v1450_v18  ;;  %v3615_v18 = vpack.c.bf16 %v2106_v8, %v2105_v5  ;;  %v2114_v5 = vld [vmem:[%s5651_s8 + $0xb8] sm:$0xff] }
 0x3d9   :  { %3237 = vmatmul.mubr.msk.f32.vlgmr.msra.gmra.mrb[32].mxu1 %vm1485_vm13, %v4799_v40  ;;  %3570 = vmatprep.subr.bf16.mxu1 %v3569_v21  ;;  %v1467_v40 = vld [vmem:[%s5648_s5 + $0x338] sm:$0xff] }
 0x3da   :  { %3572 = vmatpush1.bf16.msra.mxu1 %v3571_v31  ;;  %1873 = vmatprep.mubr.f32.mxu1 %v3926_v7  ;;  %v3581_v32 = vpack.c.bf16 %v1467_v40, %v1465_v0 }
 0x3db   :  { %3574 = vmatprep.subr.bf16.mxu1 %v3573_v23 }
 0x3dd   :  { %3238 = vmatmul.mubr.msk.f32.gmra.mrb[34].mxu1 %vm1485_vm13, %v4834_v13  ;;  %v1471_v13 = vld [vmem:[%s5648_s5 + $0x358] sm:$0xff] }
 0x3de   :  { %3576 = vmatpush1.bf16.msra.mxu1 %v3575_v20  ;;  %1879 = vmatprep.mubr.f32.mxu1 %v3926_v7  ;;  %v3585_v36 = vpack.c.bf16 %v1471_v13, %v1469_v60 }
 0x3df   :  { %3578 = vmatprep.subr.bf16.mxu1 %v3577_v34 }
 0x3e1   :  { %3239 = vmatmul.mubr.msk.f32.gmra.mrb[36].mxu1 %vm1485_vm13, %v4837_v46  ;;  %v1473_v46 = vld [vmem:[%s5648_s5 + $0x368] sm:$0xf] }
 0x3e2   :  { %3580 = vmatpush1.bf16.msra.mxu1 %v3579_v42  ;;  %1975 = vmatprep.mubr.f32.mxu1 %v3926_v7 }
 0x3e3   :  { %3582 = vmatprep.subr.bf16.mxu1 %v3581_v32 }
 0x3e6   :  { %3584 = vmatpush1.bf16.msra.mxu1 %v3583_v19 }
 0x3e7   :  { %3586 = vmatprep.subr.bf16.mxu1 %v3585_v36 }
 0x3ea   :  { %3588 = vmatpush1.bf16.msra.mxu1 %v3587_v62 }
 0x3eb   :  { %3240 = vmatprep.subr.msk.mxu1 %vm137_vm0, %v1473_v46 }
 0x3ee   :  { %3241 = vmatpush1.msk.msra.mxu1 %vm137_vm0, %v1472_v9 }
 0x3ef   :  { %3242 = vmatmul.mubr.msk.f32.vlgmr.msra.gmra.mrb[32].mxu1 %vm1485_vm13, %v4802_v49  ;;  %3593 = vmatprep.subr.bf16.mxu1 %v3928_v58  ;;  %v2092_v49 = vld [vmem:[%s5651_s8 + $0x8] sm:$0xff] }
 0x3f0   :  { %1981 = vmatprep.mubr.f32.mxu1 %v3926_v7  ;;  %v3594_v2 = vpack.c.bf16 %v2092_v49, %v2091_v57 }
 0x3f2   :  { %3595 = vmatpush1.bf16.msra.mxu1 %v3594_v2 }
 0x3f3   :  { %3243 = vmatmul.mubr.msk.f32.gmra.mrb[34].mxu1 %vm1485_vm13, %v4840_v44  ;;  %v2094_v44 = vld [vmem:[%s5651_s8 + $0x18] sm:$0xff]  ;;  %3596 = vmatprep.subr.bf16.mxu1 %v3928_v58 }
 0x3f4   :  { %1987 = vmatprep.mubr.f32.mxu1 %v3926_v7  ;;  %v3597_v4 = vpack.c.bf16 %v2094_v44, %v2093_v1 }
 0x3f6   :  { %3598 = vmatpush1.bf16.msra.mxu1 %v3597_v4 }
 0x3f7   :  { %3244 = vmatmul.mubr.msk.f32.gmra.mrb[36].mxu1 %vm1485_vm13, %v4843_v11  ;;  %v2095_v11 = vld [vmem:[%s5651_s8 + $0x20] sm:$0xff]  ;;  %3599 = vmatprep.subr.bf16.mxu1 %v3928_v58 }
 0x3f8   :  { %v3600_v59 = vpack.c.bf16 %v2096_v6, %v2095_v11 }
 0x3fa   :  { %3601 = vmatpush1.bf16.msra.mxu1 %v3600_v59 }
 0x3fb   :  { %3602 = vmatprep.subr.bf16.mxu1 %v3928_v58 }
 0x3fe   :  { %3604 = vmatpush1.bf16.msra.mxu1 %v3603_v61 }
 0x3ff   :  { %3605 = vmatprep.subr.bf16.mxu1 %v3928_v58 }
 0x402   :  { %3607 = vmatpush1.bf16.msra.mxu1 %v3606_v28 }
 0x403   :  { %3608 = vmatprep.subr.bf16.mxu1 %v3928_v58 }
 0x406   :  { %3610 = vmatpush1.bf16.msra.mxu1 %v3609_v53 }
 0x407   :  { %3611 = vmatprep.subr.bf16.mxu1 %v3928_v58 }
 0x40a   :  { %3613 = vmatpush1.bf16.msra.mxu1 %v3612_v30  ;;  %v2111_v30 = vld [vmem:[%s5651_s8 + $0xa0] sm:$0xff] }
 0x40b   :  { %3614 = vmatprep.subr.bf16.mxu1 %v3928_v58 }
 0x40e   :  { %3616 = vmatpush1.bf16.msra.mxu1 %v3615_v18 }
 0x40f   :  { %3617 = vmatprep.subr.bf16.mxu1 %v3928_v58 }
 0x412   :  { %3619 = vmatpush1.bf16.msra.mxu1 %v3618_v15  ;;  %v2123_v15 = vld [vmem:[%s5651_s8 + $0x100] sm:$0xff] }
 0x4c2   :  { %v1977_v47 = vpop.f32.mrb[32].mxu1 }
 0x4c3   :  { %v2012_v37 = vadd.f32 %v2005_v12, %v1977_v47  ;;  %v1979_v54 = vpop.f32.mrb[33].mxu1 }
 0x4c4   :  { %v2013_v17 = vadd.f32 %v2009_v14, %v1979_v54  ;;  %v2110_v54 = vld [vmem:[%s5651_s8 + $0x98] sm:$0xff] }
 0x4c5   :  { %v2018_v33 = vmax.f32 %v2012_v37, 0.0  ;;  %v2109_v37 = vld [vmem:[%s5651_s8 + $0x90] sm:$0xff] }
 0x4c6   :  { %v2019_v51 = vmax.f32 %v2013_v17, 0.0  ;;  %v1983_v56 = vpop.f32.mrb[34].mxu1  ;;  %v3625_v17 = vpack.c.bf16 %v2110_v54, %v2109_v37  ;;  %v2132_v37 = vld [vmem:[%s5651_s8 + $0x148] sm:$0xff] }
 0x4c7   :  { %v2014_v3 = vadd.f32 %v2005_v12, %v1983_v56  ;;  %v1985_v16 = vpop.f32.mrb[35].mxu1  ;;  %v2113_v56 = vld [vmem:[%s5651_s8 + $0xb0] sm:$0xff] }
 0x4c8   :  { %v3888_v21 = vpack.i.bf16 %v2019_v51, %v2018_v33  ;;  %v2015_v31 = vadd.f32 %v2009_v14, %v1985_v16  ;;  %v3631_v8 = vpack.c.bf16 %v2114_v5, %v2113_v56  ;;  %v2116_v16 = vld [vmem:[%s5651_s8 + $0xc8] sm:$0xff] }
 0x4c9   :  { %v2020_v23 = vmax.f32 %v2014_v3, 0.0  ;;  %v2115_v3 = vld [vmem:[%s5651_s8 + $0xc0] sm:$0xff] }
 0x4ca   :  { %v2021_v39 = vmax.f32 %v2015_v31, 0.0  ;;  %3889 = vrot.lane.b32.xlu1 %v3888_v21, %s3930_s25  ;;  %v1989_v26 = vpop.f32.mrb[36].mxu1  ;;  %v3634_v18 = vpack.c.bf16 %v2116_v16, %v2115_v3  ;;  %v2117_v21 = vld [vmem:[%s5651_s8 + $0xd0] sm:$0xff]  ;;  %v2118_v31 = vld [vmem:[%s5651_s8 + $0xd8] sm:$0xff]  ;;  %v2136_v3 = vld [vmem:[%s5651_s8 + $0x168] sm:$0xff] }
 0x4cb   :  { %v2016_v20 = vadd.f32 %v2005_v12, %v1989_v26  ;;  %v1991_v34 = vpop.f32.mrb[37].mxu1  ;;  %v2120_v26 = vld [vmem:[%s5651_s8 + $0xe8] sm:$0xff] }
 0x4cc   :  { %v3893_v55 = vpack.i.bf16 %v2021_v39, %v2020_v23  ;;  %v2017_v0 = vadd.f32 %v2009_v14, %v1991_v34 }
 0x4cd   :  { %v2022_v40 = vmax.f32 %v2016_v20, 0.0  ;;  %v2122_v20 = vld [vmem:[%s5651_s8 + $0xf8] sm:$0xff] }
 0x4ce   :  { %3894 = vrot.lane.b32.xlu0 %v3893_v55, %s3930_s25  ;;  %v2023_v42 = vmax.f32 %v2017_v0, 0.0  ;;  %v3643_v34 = vpack.c.bf16 %v2122_v20, %v2121_v29  ;;  %v2124_v55 = vld [vmem:[%s5651_s8 + $0x108] sm:$0xff] }
 0x4cf   :  { %2038 = vrot.lane.b32.xlu1 %v2022_v40, %s3930_s25  ;;  %v3646_v0 = vpack.c.bf16 %v2124_v55, %v2123_v15  ;;  %v2140_v29 = vld [vmem:[%s5651_s8 + $0x188] sm:$0xff]  ;;  %v2142_v15 = vld [vmem:[%s5651_s8 + $0x198] sm:$0xff] }
 0x4d2   :  { %2040 = vrot.lane.b32.xlu0 %v2023_v42, %s3930_s25 }
 0x53c   :  { %v3890_v32 = vpop.permute.xlu1 %3889 }
 0x53d   :  { %v3892_v63 = vunpack.i.h.bf16 %v3890_v32  ;;  %v3891_v41 = vunpack.i.l.bf16 %v3890_v32  ;;  %v2087_v32 = vld [vmem:[%s5650_s7 + $0x2] sm:$0x3] }
 0x53f   :  { %v2043_v60 = vsel %vm2042_vm14, %v3891_v41, %v3892_v63  ;;  %v2053_v19 = vmax.f32 %v2019_v51, %v3892_v63  ;;  %v2088_v63 = vld [vmem:[%s5650_s7 + $0x4] sm:$0x3]  ;;  %v2089_v41 = vld [vmem:[%s5650_s7 + $0x6] sm:$0x3] }
 0x540   :  { %v3895_v13 = vpop.permute.xlu0 %3894  ;;  %v2052_v43 = vmax.f32 %v2018_v33, %v2043_v60  ;;  %v2112_v33 = vld [vmem:[%s5651_s8 + $0xa8] sm:$0xff] }
 0x541   :  { %v3897_v36 = vunpack.i.h.bf16 %v3895_v13  ;;  %v3896_v38 = vunpack.i.l.bf16 %v3895_v13  ;;  %v2039_v9 = vpop.permute.xlu1 %2038  ;;  %v2067_v1 = vrot.slane %v2053_v19, 1  ;;  %v3628_v51 = vpack.c.bf16 %v2112_v33, %v2111_v30  ;;  %v2090_v60 = vld [vmem:[%s5650_s7 + $0x8] sm:$0x3]  ;;  %v2125_v13 = vld [vmem:[%s5651_s8 + $0x110] sm:$0xff] }
 0x542   :  { %v2064_v11 = vrot.slane %v2052_v43, 1  ;;  %v2133_v33 = vld [vmem:[%s5651_s8 + $0x150] sm:$0xff] }
 0x543   :  { %v2055_v62 = vmax.f32 %v2021_v39, %v3897_v36  ;;  %v2044_v46 = vsel %vm2042_vm14, %v3896_v38, %v3897_v36  ;;  %v2119_v39 = vld [vmem:[%s5651_s8 + $0xe0] sm:$0xff] }
 0x544   :  { %v2054_v57 = vmax.f32 %v2020_v23, %v2044_v46  ;;  %v2041_v49 = vpop.permute.xlu0 %2040  ;;  %v3637_v23 = vpack.c.bf16 %v2118_v31, %v2117_v21  ;;  %v3640_v27 = vpack.c.bf16 %v2120_v26, %v2119_v39  ;;  %v2937_v38 = vld [vmem:[%s5653_s10] sm:$0xff]  ;;  %v2137_v21 = vld [vmem:[%s5651_s8 + $0x170] sm:$0xff]  ;;  %v2138_v31 = vld [vmem:[%s5651_s8 + $0x178] sm:$0xff] }
 0x545   :  { %v2068_v2 = vrot.slane %v2055_v62, 1  ;;  %v2045_v44 = vsel %vm2042_vm14, %v2039_v9, %v2041_v49  ;;  %v2057_v4 = vmax.f32 %v2023_v42, %v2041_v49  ;;  %v2940_v9 = vld [vmem:[%s5653_s10 + $0x18] sm:$0xff]  ;;  %v2941_v49 = vld [vmem:[%s5653_s10 + $0x20] sm:$0xff]  ;;  %v3671_v26 = vpack.c.bf16 %v2138_v31, %v2137_v21  ;;  %v2177_v31 = vld [vmem:[%s5651_s8 + $0x2b0] sm:$0xff] }
 0x546   :  { %v2065_v6 = vrot.slane %v2054_v57, 1  ;;  %v2056_v59 = vmax.f32 %v2022_v40, %v2045_v44  ;;  %v2943_v44 = vld [vmem:[%s5653_s10 + $0x30] sm:$0xff] }
 0x547   :  { %v2069_v25 = vsel %vm104_vm4, %v2067_v1, %v2068_v2  ;;  %v2072_v45 = vrot.slane %v2057_v4, 1  ;;  %v2942_v1 = vld [vmem:[%s5653_s10 + $0x28] sm:$0xff] }
 0x548   :  { %v2066_v61 = vsel %vm104_vm4, %v2064_v11, %v2065_v6  ;;  %v2070_v22 = vrot.slane %v2056_v59, 1  ;;  %v2081_v28 = vmax.f32 %v2053_v19, %v2069_v25  ;;  %v2126_v19 = vld [vmem:[%s5651_s8 + $0x118] sm:$0xff]  ;;  %v2945_v25 = vld [vmem:[%s5653_s10 + $0x40] sm:$0xff] }
 0x549   :  { %v2073_v52 = vsel %vm104_vm4, %v2068_v2, %v2072_v45  ;;  %v2080_v10 = vmax.f32 %v2052_v43, %v2066_v61  ;;  %v5194_v47 = vmax.f32 %v2057_v4, %v2072_v45  ;;  %v3649_v36 = vpack.c.bf16 %v2126_v19, %v2125_v13  ;;  %v2938_v43 = vld [vmem:[%s5653_s10 + $0x8] sm:$0xff]  ;;  %v2944_v4 = vld [vmem:[%s5653_s10 + $0x38] sm:$0xff]  ;;  %v2127_v61 = vld [vmem:[%s5651_s8 + $0x120] sm:$0xff] }
 0x54a   :  { %v2071_v24 = vsel %vm104_vm4, %v2065_v6, %v2070_v22  ;;  %v2083_v35 = vmax.f32 %v2055_v62, %v2073_v52  ;;  %v5201_v50 = vmax.f32 %v2056_v59, %v2070_v22  ;;  %v2939_v62 = vld [vmem:[%s5653_s10 + $0x10] sm:$0xff]  ;;  %v3745_v46 = vpack.c.bf16 %v2938_v43, %v2937_v38  ;;  %v2946_v45 = vld [vmem:[%s5653_s10 + $0x48] sm:$0xff]  ;;  %v2150_v38 = vld [vmem:[%s5651_s8 + $0x1d8] sm:$0xff] }
 0x54b   :  { %v2082_v12 = vmax.f32 %v2054_v57, %v2071_v24  ;;  %v3748_v57 = vpack.c.bf16 %v2940_v9, %v2939_v62  ;;  %v3751_v2 = vpack.c.bf16 %v2942_v1, %v2941_v49  ;;  %v3754_v6 = vpack.c.bf16 %v2944_v4, %v2943_v44  ;;  %v2128_v22 = vld [vmem:[%s5651_s8 + $0x128] sm:$0xff]  ;;  %v2948_v24 = vld [vmem:[%s5653_s10 + $0x58] sm:$0xff]  ;;  %v2151_v62 = vld [vmem:[%s5651_s8 + $0x1e0] sm:$0xff] }
 0x54c   :  { %v5190_v53 = vpack.c.bf16 %v2083_v35, %v2081_v28  ;;  %v3757_v52 = vpack.c.bf16 %v2946_v45, %v2945_v25  ;;  %v2947_v28 = vld [vmem:[%s5653_s10 + $0x50] sm:$0xff]  ;;  %v2148_v13 = vld [vmem:[%s5651_s8 + $0x1c8] sm:$0xff]  ;;  %v2154_v49 = vld [vmem:[%s5651_s8 + $0x1f8] sm:$0xff] }
 0x54d   :  { %v5192_v14 = vpack.c.bf16 %v2082_v12, %v2080_v10  ;;  %v3656_v10 = vpack.c.bf16 %v2128_v22, %v2127_v61  ;;  %v2156_v44 = vld [vmem:[%s5651_s8 + $0x208] sm:$0xff]  ;;  %v2159_v45 = vld [vmem:[%s5651_s8 + $0x220] sm:$0xff] }
 0x54e   :  { %3590 = vmatprep.subr.bf16.mxu0 %v5190_v53  ;;  %3621 = vmatprep.subr.bf16.mxu1 %v5190_v53  ;;  %v2160_v61 = vld [vmem:[%s5651_s8 + $0x228] sm:$0xff] }
 0x54f   :  { %3592 = vmatpush1.bf16.msra.mxu0 %v5192_v14  ;;  %v3708_v22 = vpack.c.bf16 %v2160_v61, %v2159_v45 }
 0x550   :  { %3245 = vmatprep.subr.msk.mxu0 %vm104_vm4, %v5194_v47 }
 0x553   :  { %3246 = vmatpush1.msk.msra.mxu0 %vm104_vm4, %v5201_v50 }
 0x554   :  { %3247 = vmatmul.mubr.msk.f32.vlgmr.msra.gmra.mrb[20].mxu0 %vm2182_vm15, %v2086_v48  ;;  %3624 = vmatprep.subr.bf16.mxu0 %v3928_v58  ;;  %v2131_v48 = vld [vmem:[%s5651_s8 + $0x140] sm:$0xff] }
 0x555   :  { %3626 = vmatpush1.bf16.msra.mxu0 %v3625_v17  ;;  %v3662_v17 = vpack.c.bf16 %v2132_v37, %v2131_v48  ;;  %v2168_v48 = vld [vmem:[%s5651_s8 + $0x268] sm:$0xff] }
 0x556   :  { %3627 = vmatprep.subr.bf16.mxu0 %v3928_v58 }
 0x559   :  { %3629 = vmatpush1.bf16.msra.mxu0 %v3628_v51  ;;  %v2134_v51 = vld [vmem:[%s5651_s8 + $0x158] sm:$0xff] }
 0x55a   :  { %3630 = vmatprep.subr.bf16.mxu0 %v3928_v58  ;;  %v3665_v56 = vpack.c.bf16 %v2134_v51, %v2133_v33  ;;  %v2171_v33 = vld [vmem:[%s5651_s8 + $0x280] sm:$0xff]  ;;  %v2172_v51 = vld [vmem:[%s5651_s8 + $0x288] sm:$0xff] }
 0x55d   :  { %3632 = vmatpush1.bf16.msra.mxu0 %v3631_v8  ;;  %v2135_v8 = vld [vmem:[%s5651_s8 + $0x160] sm:$0xff] }
 0x55e   :  { %3633 = vmatprep.subr.bf16.mxu0 %v3928_v58 }
 0x561   :  { %3635 = vmatpush1.bf16.msra.mxu0 %v3634_v18  ;;  %v3668_v18 = vpack.c.bf16 %v2136_v3, %v2135_v8  ;;  %v2174_v8 = vld [vmem:[%s5651_s8 + $0x298] sm:$0xff] }
 0x562   :  { %3636 = vmatprep.subr.bf16.mxu0 %v3928_v58 }
 0x565   :  { %3638 = vmatpush1.bf16.msra.mxu0 %v3637_v23 }
 0x566   :  { %3639 = vmatprep.subr.bf16.mxu0 %v3928_v58 }
 0x569   :  { %3641 = vmatpush1.bf16.msra.mxu0 %v3640_v27  ;;  %v2139_v27 = vld [vmem:[%s5651_s8 + $0x180] sm:$0xff] }
 0x56a   :  { %3642 = vmatprep.subr.bf16.mxu0 %v3928_v58  ;;  %v3674_v20 = vpack.c.bf16 %v2140_v29, %v2139_v27  ;;  %v2179_v27 = vld [vmem:[%s5651_s8 + $0x2c0] sm:$0xff]  ;;  %v2180_v29 = vld [vmem:[%s5651_s8 + $0x2c8] sm:$0xff] }
 0x56d   :  { %3644 = vmatpush1.bf16.msra.mxu0 %v3643_v34  ;;  %v2141_v34 = vld [vmem:[%s5651_s8 + $0x190] sm:$0xff] }
 0x56e   :  { %3645 = vmatprep.subr.bf16.mxu0 %v3928_v58  ;;  %v3677_v55 = vpack.c.bf16 %v2142_v15, %v2141_v34  ;;  %v2949_v34 = vld [vmem:[%s5653_s10 + $0x60] sm:$0xff]  ;;  %v2950_v15 = vld [vmem:[%s5653_s10 + $0x68] sm:$0xff] }
 0x571   :  { %3647 = vmatpush1.bf16.msra.mxu0 %v3646_v0  ;;  %v2143_v0 = vld [vmem:[%s5651_s8 + $0x1a0] sm:$0xff] }
 0x572   :  { %3648 = vmatprep.subr.bf16.mxu0 %v3928_v58 }
 0x575   :  { %3650 = vmatpush1.bf16.msra.mxu0 %v3649_v36  ;;  %v2149_v36 = vld [vmem:[%s5651_s8 + $0x1d0] sm:$0xff] }
 0x576   :  { %3655 = vmatprep.subr.bf16.mxu0 %v3928_v58  ;;  %v3693_v43 = vpack.c.bf16 %v2150_v38, %v2149_v36  ;;  %v3036_v36 = vld [vmem:[%s5655_s12 + $0x10] sm:$0xff] }
 0x627   :  { %v2258_v40 = vpop.f32.mrb[20].mxu0 }
 0x628   :  { %v2260_v42 = vpop.f32.mrb[21].mxu0 }
 0x629   :  { %3248 = vmatprep.mubr.msk.f32.mxu1 %vm2263_vm1, %v2260_v42 }
 0x62a   :  { %2332 = vmatmul.mubr.f32.vlgmr.msra.gmra.mrb[38].mxu1 %v2258_v40  ;;  %v2144_v40 = vld [vmem:[%s5651_s8 + $0x1a8] sm:$0xff] }
 0x62b   :  { %3623 = vmatpush1.bf16.msra.mxu1 %v5192_v14  ;;  %2411 = vmatprep.mubr.f32.mxu1 %v3926_v7  ;;  %v3680_v42 = vpack.c.bf16 %v2144_v40, %v2143_v0  ;;  %v2951_v0 = vld [vmem:[%s5653_s10 + $0x70] sm:$0xff] }
 0x62c   :  { %3250 = vmatprep.subr.msk.mxu1 %vm104_vm4, %v5194_v47 }
 0x62f   :  { %3251 = vmatpush1.msk.msra.mxu1 %vm104_vm4, %v5201_v50 }
 0x630   :  { %3252 = vmatmul.mubr.msk.f32.vlgmr.msra.gmra.mrb[40].mxu1 %vm2182_vm15, %v2087_v32  ;;  %3652 = vmatprep.subr.bf16.mxu1 %v5190_v53  ;;  %v2145_v32 = vld [vmem:[%s5651_s8 + $0x1b0] sm:$0xff] }
 0x631   :  { %3654 = vmatpush1.bf16.msra.mxu1 %v5192_v14  ;;  %2559 = vmatprep.mubr.f32.mxu1 %v3926_v7 }
 0x632   :  { %3254 = vmatprep.subr.msk.mxu1 %vm104_vm4, %v5194_v47 }
 0x635   :  { %3255 = vmatpush1.msk.msra.mxu1 %vm104_vm4, %v5201_v50 }
 0x636   :  { %3683 = vmatprep.subr.bf16.mxu1 %v5190_v53  ;;  %3256 = vmatmul.mubr.msk.f32.vlgmr.msra.gmra.mrb[42].mxu1 %vm2182_vm15, %v2088_v63  ;;  %v2146_v63 = vld [vmem:[%s5651_s8 + $0x1b8] sm:$0xff] }
 0x637   :  { %3685 = vmatpush1.bf16.msra.mxu1 %v5192_v14  ;;  %2707 = vmatprep.mubr.f32.mxu1 %v3926_v7 }
 0x638   :  { %3258 = vmatprep.subr.msk.mxu1 %vm104_vm4, %v5194_v47 }
 0x63b   :  { %3259 = vmatpush1.msk.msra.mxu1 %vm104_vm4, %v5201_v50 }
 0x63c   :  { %3714 = vmatprep.subr.bf16.mxu1 %v5190_v53  ;;  %3260 = vmatmul.mubr.msk.f32.vlgmr.msra.gmra.mrb[44].mxu1 %vm2182_vm15, %v2089_v41  ;;  %v2129_v53 = vld [vmem:[%s5651_s8 + $0x130] sm:$0xff]  ;;  %v3687_v41 = vpack.c.bf16 %v2146_v63, %v2145_v32  ;;  %v3035_v32 = vld [vmem:[%s5655_s12 + $0x8] sm:$0xff] }
 0x63d   :  { %3716 = vmatpush1.bf16.msra.mxu1 %v5192_v14  ;;  %2855 = vmatprep.mubr.f32.mxu1 %v3926_v7  ;;  %v2130_v14 = vld [vmem:[%s5651_s8 + $0x138] sm:$0xff] }
 0x63e   :  { %3262 = vmatprep.subr.msk.mxu1 %vm104_vm4, %v5194_v47  ;;  %v3760_v47 = vpack.c.bf16 %v2948_v24, %v2947_v28  ;;  %v2162_v28 = vld [vmem:[%s5651_s8 + $0x238] sm:$0xff] }
 0x641   :  { %3263 = vmatpush1.msk.msra.mxu1 %vm104_vm4, %v5201_v50  ;;  %v3659_v50 = vpack.c.bf16 %v2130_v14, %v2129_v53  ;;  %v2165_v53 = vld [vmem:[%s5651_s8 + $0x250] sm:$0xff]  ;;  %v2166_v14 = vld [vmem:[%s5651_s8 + $0x258] sm:$0xff]  ;;  %vm3128_vm4 = vcmask 74752  }
 0x642   :  { %3264 = vmatmul.mubr.msk.f32.vlgmr.msra.gmra.mrb[46].mxu1 %vm2182_vm15, %v2090_v60  ;;  %3744 = vmatprep.subr.bf16.mxu1 %v3928_v58  ;;  %v2147_v60 = vld [vmem:[%s5651_s8 + $0x1c0] sm:$0xff] }
 0x643   :  { %3746 = vmatpush3.bf16.msra.mxu1 %v3745_v46  ;;  %v3690_v19 = vpack.c.bf16 %v2148_v13, %v2147_v60  ;;  %v2152_v46 = vld [vmem:[%s5651_s8 + $0x1e8] sm:$0xff]  ;;  %3363 = vmatprep.mubr.msk.f32.mxu1 %vm3931_vm2, %v3926_v7 }
 0x644   :  { %3747 = vmatprep.subr.bf16.mxu1 %v3928_v58  ;;  %v3696_v9 = vpack.c.bf16 %v2152_v46, %v2151_v62  ;;  %v3039_v62 = vld [vmem:[%s5655_s12 + $0x28] sm:$0xff] }
 0x647   :  { %3749 = vmatpush3.bf16.msra.mxu1 %v3748_v57  ;;  %v2153_v57 = vld [vmem:[%s5651_s8 + $0x1f0] sm:$0xff] }
 0x648   :  { %3750 = vmatprep.subr.bf16.mxu1 %v3928_v58  ;;  %v3699_v1 = vpack.c.bf16 %v2154_v49, %v2153_v57  ;;  %v3041_v57 = vld [vmem:[%s5655_s12 + $0x38] sm:$0xff] }
 0x64b   :  { %3752 = vmatpush3.bf16.msra.mxu1 %v3751_v2  ;;  %v2155_v2 = vld [vmem:[%s5651_s8 + $0x200] sm:$0xff] }
 0x64c   :  { %3753 = vmatprep.subr.bf16.mxu1 %v3928_v58  ;;  %v3702_v4 = vpack.c.bf16 %v2156_v44, %v2155_v2  ;;  %v3043_v2 = vld [vmem:[%s5655_s12 + $0x48] sm:$0xff] }
 0x64f   :  { %3755 = vmatpush3.bf16.msra.mxu1 %v3754_v6  ;;  %v2157_v6 = vld [vmem:[%s5651_s8 + $0x210] sm:$0xff] }
 0x650   :  { %3756 = vmatprep.subr.bf16.mxu1 %v3928_v58 }
 0x653   :  { %3758 = vmatpush3.bf16.msra.mxu1 %v3757_v52  ;;  %v2161_v52 = vld [vmem:[%s5651_s8 + $0x230] sm:$0xff] }
 0x654   :  { %3759 = vmatprep.subr.bf16.mxu1 %v3928_v58  ;;  %v3711_v24 = vpack.c.bf16 %v2162_v28, %v2161_v52 }
 0x657   :  { %3761 = vmatpush3.bf16.msra.mxu1 %v3760_v47  ;;  %v3721_v47 = vpack.c.bf16 %v2166_v14, %v2165_v53 }
 0x658   :  { %3762 = vmatprep.subr.bf16.mxu1 %v3928_v58 }
 0x6fd   :  { %v5344_v11 = vpop.f32.mrb[38].mxu1 }
 0x6fe   :  { %v2335_v59 = vpop.f32.mrb[39].mxu1 }
 0x6ff   :  { %v2158_v59 = vld [vmem:[%s5651_s8 + $0x218] sm:$0xff] }
 0x700   :  { %v3705_v25 = vpack.c.bf16 %v2158_v59, %v2157_v6 }
 0x703   :  { %v2413_v35 = vpop.f32.mrb[40].mxu1 }
 0x704   :  { %v2415_v12 = vpop.f32.mrb[41].mxu1 }
 0x705   :  { %3253 = vmatprep.mubr.msk.f32.mxu0 %vm2263_vm1, %v2415_v12 }
 0x706   :  { %2486 = vmatmul.mubr.f32.vlgmr.msra.gmra.mrb[22].mxu0 %v2413_v35  ;;  %v2163_v35 = vld [vmem:[%s5651_s8 + $0x240] sm:$0xff] }
 0x707   :  { %3657 = vmatpush1.bf16.msra.mxu0 %v3656_v10  ;;  %v2164_v10 = vld [vmem:[%s5651_s8 + $0x248] sm:$0xff] }
 0x708   :  { %3658 = vmatprep.subr.bf16.mxu0 %v3928_v58  ;;  %v3718_v12 = vpack.c.bf16 %v2164_v10, %v2163_v35 }
 0x709   :  { %v2561_v54 = vpop.f32.mrb[42].mxu1 }
 0x70a   :  { %v2563_v30 = vpop.f32.mrb[43].mxu1 }
 0x70b   :  { %3660 = vmatpush1.bf16.msra.mxu0 %v3659_v50  ;;  %3257 = vmatprep.mubr.msk.f32.mxu0 %vm2263_vm1, %v2563_v30  ;;  %v2167_v50 = vld [vmem:[%s5651_s8 + $0x260] sm:$0xff]  ;;  %v2170_v30 = vld [vmem:[%s5651_s8 + $0x278] sm:$0xff] }
 0x70c   :  { %3661 = vmatprep.subr.bf16.mxu0 %v3928_v58  ;;  %v3724_v37 = vpack.c.bf16 %v2168_v48, %v2167_v50 }
 0x70f   :  { %3663 = vmatpush1.bf16.msra.mxu0 %v3662_v17  ;;  %v5390_v5 = vpop.f32.mrb[44].mxu1 }
 0x710   :  { %3664 = vmatprep.subr.bf16.mxu0 %v3928_v58  ;;  %v2711_v16 = vpop.f32.mrb[45].mxu1 }
 0x713   :  { %3666 = vmatpush1.bf16.msra.mxu0 %v3665_v56  ;;  %v3730_v56 = vpack.c.bf16 %v2172_v51, %v2171_v33 }
 0x714   :  { %3667 = vmatprep.subr.bf16.mxu0 %v3928_v58 }
 0x715   :  { %v5406_v23 = vpop.f32.mrb[46].mxu1 }
 0x716   :  { %v5408_v39 = vpop.f32.mrb[47].mxu1 }
 0x717   :  { %3669 = vmatpush1.bf16.msra.mxu0 %v3668_v18  ;;  %v2176_v18 = vld [vmem:[%s5651_s8 + $0x2a8] sm:$0xff] }
 0x718   :  { %3670 = vmatprep.subr.bf16.mxu0 %v3928_v58 }
 0x71b   :  { %3672 = vmatpush1.bf16.msra.mxu0 %v3671_v26 }
 0x71c   :  { %3673 = vmatprep.subr.bf16.mxu0 %v3928_v58 }
 0x71f   :  { %3675 = vmatpush1.bf16.msra.mxu0 %v3674_v20  ;;  %v3742_v20 = vpack.c.bf16 %v2180_v29, %v2179_v27 }
 0x720   :  { %3676 = vmatprep.subr.bf16.mxu0 %v3928_v58 }
 0x723   :  { %3678 = vmatpush1.bf16.msra.mxu0 %v3677_v55  ;;  %v3763_v55 = vpack.c.bf16 %v2950_v15, %v2949_v34 }
 0x724   :  { %3679 = vmatprep.subr.bf16.mxu0 %v3928_v58 }
 0x725   :  { %3764 = vmatpush3.bf16.msra.mxu1 %v3763_v55 }
 0x726   :  { %3361 = vmatprep.subr.mxu1 %v3926_v7 }
 0x727   :  { %3681 = vmatpush1.bf16.msra.mxu0 %v3680_v42  ;;  %v3034_v42 = vld [vmem:[%s5655_s12] sm:$0xff] }
 0x728   :  { %3686 = vmatprep.subr.bf16.mxu0 %v3928_v58  ;;  %v3766_v13 = vpack.c.bf16 %v3035_v32, %v3034_v42 }
 0x729   :  { %3362 = vmatpush3.msra.mxu1 %v2951_v0 }
 0x72a   :  { %2634 = vmatmul.mubr.f32.vlgmr.msra.gmra.mrb[22].mxu0 %v2561_v54  ;;  %v2169_v54 = vld [vmem:[%s5651_s8 + $0x270] sm:$0xff]  ;;  %3765 = vmatprep.subr.bf16.mxu1 %v3928_v58 }
 0x72b   :  { %3688 = vmatpush1.bf16.msra.mxu0 %v3687_v41  ;;  %3261 = vmatprep.mubr.msk.f32.mxu0 %vm2263_vm1, %v2711_v16  ;;  %v3727_v17 = vpack.c.bf16 %v2170_v30, %v2169_v54  ;;  %v2175_v16 = vld [vmem:[%s5651_s8 + $0x2a0] sm:$0xff] }
 0x72c   :  { %3689 = vmatprep.subr.bf16.mxu0 %v3928_v58  ;;  %v3736_v21 = vpack.c.bf16 %v2176_v18, %v2175_v16 }
 0x72f   :  { %3691 = vmatpush1.bf16.msra.mxu0 %v3690_v19 }
 0x730   :  { %3692 = vmatprep.subr.bf16.mxu0 %v3928_v58 }
 0x733   :  { %3694 = vmatpush1.bf16.msra.mxu0 %v3693_v43  ;;  %v3038_v43 = vld [vmem:[%s5655_s12 + $0x20] sm:$0xff] }
 0x734   :  { %3695 = vmatprep.subr.bf16.mxu0 %v3928_v58  ;;  %v3772_v46 = vpack.c.bf16 %v3039_v62, %v3038_v43 }
 0x737   :  { %3697 = vmatpush1.bf16.msra.mxu0 %v3696_v9  ;;  %v3040_v9 = vld [vmem:[%s5655_s12 + $0x30] sm:$0xff] }
 0x738   :  { %3698 = vmatprep.subr.bf16.mxu0 %v3928_v58  ;;  %v3775_v49 = vpack.c.bf16 %v3041_v57, %v3040_v9 }
 0x73b   :  { %3700 = vmatpush1.bf16.msra.mxu0 %v3699_v1  ;;  %v3042_v1 = vld [vmem:[%s5655_s12 + $0x40] sm:$0xff] }
 0x73c   :  { %3701 = vmatprep.subr.bf16.mxu0 %v3928_v58  ;;  %v3778_v44 = vpack.c.bf16 %v3043_v2, %v3042_v1 }
 0x73f   :  { %3703 = vmatpush1.bf16.msra.mxu0 %v3702_v4  ;;  %v3044_v4 = vld [vmem:[%s5655_s12 + $0x50] sm:$0xf] }
 0x740   :  { %3704 = vmatprep.subr.bf16.mxu0 %v3928_v58 }
 0x743   :  { %3706 = vmatpush1.bf16.msra.mxu0 %v3705_v25 }
 0x744   :  { %3707 = vmatprep.subr.bf16.mxu0 %v3928_v58 }
 0x747   :  { %3709 = vmatpush1.bf16.msra.mxu0 %v3708_v22 }
 0x748   :  { %3710 = vmatprep.subr.bf16.mxu0 %v3928_v58 }
 0x74b   :  { %3712 = vmatpush1.bf16.msra.mxu0 %v3711_v24 }
 0x74c   :  { %3717 = vmatprep.subr.bf16.mxu0 %v3928_v58 }
 0x74e   :  { %2782 = vmatmul.mubr.f32.vlgmr.msra.gmra.mrb[22].mxu0 %v5390_v5  ;;  %v2173_v5 = vld [vmem:[%s5651_s8 + $0x290] sm:$0xff] }
 0x74f   :  { %3719 = vmatpush1.bf16.msra.mxu0 %v3718_v12  ;;  %3265 = vmatprep.mubr.msk.f32.mxu0 %vm2263_vm1, %v5408_v39  ;;  %v3733_v3 = vpack.c.bf16 %v2174_v8, %v2173_v5  ;;  %v2178_v39 = vld [vmem:[%s5651_s8 + $0x2b8] sm:$0xff] }
 0x750   :  { %3720 = vmatprep.subr.bf16.mxu0 %v3928_v58  ;;  %v3739_v26 = vpack.c.bf16 %v2178_v39, %v2177_v31 }
 0x753   :  { %3722 = vmatpush1.bf16.msra.mxu0 %v3721_v47 }
 0x754   :  { %3723 = vmatprep.subr.bf16.mxu0 %v3928_v58 }
 0x757   :  { %3725 = vmatpush1.bf16.msra.mxu0 %v3724_v37 }
 0x758   :  { %3726 = vmatprep.subr.bf16.mxu0 %v3928_v58 }
 0x75b   :  { %3728 = vmatpush1.bf16.msra.mxu0 %v3727_v17 }
 0x75c   :  { %3729 = vmatprep.subr.bf16.mxu0 %v3928_v58 }
 0x75f   :  { %3731 = vmatpush1.bf16.msra.mxu0 %v3730_v56 }
 0x760   :  { %3732 = vmatprep.subr.bf16.mxu0 %v3928_v58 }
 0x763   :  { %3734 = vmatpush1.bf16.msra.mxu0 %v3733_v3 }
 0x764   :  { %3735 = vmatprep.subr.bf16.mxu0 %v3928_v58 }
 0x767   :  { %3737 = vmatpush1.bf16.msra.mxu0 %v3736_v21 }
 0x768   :  { %3738 = vmatprep.subr.bf16.mxu0 %v3928_v58 }
 0x76b   :  { %3740 = vmatpush1.bf16.msra.mxu0 %v3739_v26 }
 0x76c   :  { %3741 = vmatprep.subr.bf16.mxu0 %v3928_v58 }
 0x76f   :  { %3743 = vmatpush1.bf16.msra.mxu0 %v3742_v20 }
 0x772   :  { %2930 = vmatmul.mubr.f32.vlgmr.msra.gmra.mrb[22].mxu0 %v5406_v23  ;;  %v3249_v23 = vld [vmem:[%s5652_s9] ss:$0 sm:$0xff] }
 0x773   :  { %v2343_v40 = vadd.f32 %v3249_v23, %v5344_v11  ;;  %v3037_v11 = vld [vmem:[%s5655_s12 + $0x18] sm:$0xff] }
 0x774   :  { %v3769_v38 = vpack.c.bf16 %v3037_v11, %v3036_v36 }
 0x845   :  { %v2931_v63 = vpop.f32.mrb[22].mxu0 }
 0x846   :  { %v3797_v41 = vadd.f32 %v2931_v63, %v2343_v40  ;;  %v2933_v60 = vpop.f32.mrb[23].mxu0 }
 0x848   :  { %v2936_v19 = vmax.f32 %v3797_v41, 0.0 }
 0x84a   :  { %3364 = vmatmul.mubr.msk.f32.vlgmr.msra.gmra.mrb[48].mxu1 %vm2959_vm3, %v2936_v19 }
 0x84b   :  { %3767 = vmatpush3.bf16.msra.mxu1 %v3766_v13  ;;  %3388 = vmatprep.mubr.msk.f32.mxu1 %vm3931_vm2, %v3926_v7 }
 0x84c   :  { %3768 = vmatprep.subr.bf16.mxu1 %v3928_v58 }
 0x84f   :  { %3770 = vmatpush3.bf16.msra.mxu1 %v3769_v38 }
 0x850   :  { %3771 = vmatprep.subr.bf16.mxu1 %v3928_v58 }
 0x853   :  { %3773 = vmatpush3.bf16.msra.mxu1 %v3772_v46 }
 0x854   :  { %3774 = vmatprep.subr.bf16.mxu1 %v3928_v58 }
 0x857   :  { %3776 = vmatpush3.bf16.msra.mxu1 %v3775_v49 }
 0x858   :  { %3777 = vmatprep.subr.bf16.mxu1 %v3928_v58  ;;  %v3266_v58 = vld [vmem:[%s5654_s11] ss:$0 sm:$0xff]  ;;  %s3932_s11 = smov [#allocation2]  }
 0x859   :  { %s3148_s12 = sshll.u32 %s3932_s11, 4  ;;  %s3149_s12 = int_to_ptr.vmem [resolvable:$true] %s3148_s12 }
 0x85a   :  { %p3907_p1 = scmp.lt.s32.totalorder %s3149_s12, %s3149_s12 }
 0x85b   :  { %3779 = vmatpush3.bf16.msra.mxu1 %v3778_v44 }
 0x85c   :  { %3386 = vmatprep.subr.mxu1 %v3926_v7  ;;  %v3268_v7 = vld [vmem:[%s5656_s13] ss:$0 sm:$0xff]  ;;  %s3902_s13 = scalar_lea.vmem %s3149_s12, 32 }
 0x85d   :  { %p3903_p0 = scmp.ne.s32.totalorder %s3149_s12, %s3902_s13  ;;  %p3908_p2 = scmp.lt.s32.totalorder %s3902_s13, %s3902_s13 }
 0x85f   :  { %3387 = vmatpush3.msk.msra.mxu1 %vm137_vm0, %v3044_v4  ;;  %p3909_p3 = por %p3908_p2, %p3907_p1 }
 0x861   :  { %p3910_p4 = pnand %p3909_p3, %p3903_p0 }
 0x91d   :  { %v3029_v6 = vpop.f32.mrb[48].mxu1 }
 0x91e   :  { %v3030_v59 = vadd.f32 %v3266_v58, %v3029_v6  ;;  %v3365_v25 = vpop.f32.mrb[49].mxu1 }
 0x920   :  { %v3033_v45 = vmax.f32 %v3030_v59, 0.0 }
 0x922   :  { %3389 = vmatmul.mubr.msk.f32.vlgmr.msra.gmra.mrb[50].mxu1 %vm1485_vm13, %v3033_v45 }
 0x9f5   :  { %v3124_v61 = vpop.f32.mrb[50].mxu1 }
 0x9f6   :  { %v3125_v22 = vadd.f32 %v3268_v7, %v3124_v61  ;;  %v3390_v52 = vpop.f32.mrb[51].mxu1 }
 0x9f8   :  { %v3129_v28 = vsel %vm3128_vm4, %v3125_v22, -inf }
 0x9f9   :  { %3130 = vmax.xlane.f32.xlu1 %v3129_v28 }
 0xa86   :  { %v3131_v24 = vpop.xlane.xlu1 %3130 }
 0xa87   :  { %v3132_v35 = vsub.f32 %v3125_v22, %v3131_v24 }
 0xa89   :  { %v3133_v10 = vmul.f32 1.442695, %v3132_v35 }
 0xa8b   :  { %3898 = vpow2.f32 %v3133_v10 }
 0xa95   :  { %v3899_v12 = vpop.eup %3898 }
 0xa96   :  { %v3135_v53 = vsel %vm3128_vm4, %v3899_v12, 0.0 }
 0xa97   :  { %3136 = vadd.xlane.f32.xlu0 %v3135_v53 }
 0xb24   :  { %v3137_v14 = vpop.xlane.xlu0 %3136 }
 0xb25   :  { %3900 = vlog2.f32 %v3137_v14 }
 0xb2f   :  { %v3901_v47 = vpop.eup %3900 }
 0xb30   :  { %v3139_v50 = vmul.f32 0.6931472, %v3901_v47 }
 0xb32   :  { %v3140_v48 = vsub.f32 %v3132_v35, %v3139_v50 }
 0xb34   :  { %3141 = vst.msk [vmem:[#allocation2] sm:$0x3] %vm3128_vm4, %v3140_v48 }
 0xb35   :  { %3913 = shalt.err (!%p3910_p4)
}
 0xb36   :  { %s3914_s26 = scalar_lea.hbm %s5657_s14, 32 }
 0xb37   :  { %p3915_p5 = scmp.ne.s32.totalorder %s5657_s14, %s3914_s26  ;;  %p3918_p6 = scmp.lt.u32.totalorder %s3914_s26, %s5657_s14 }
 0xb39   :  { %p3920_p7 = pnand %p3918_p6, %p3915_p5 }
 0xb3b   :  { %3923 = shalt.err (!%p3920_p7)
}
 0xb3c   :  { %3151 = dma.vmem_to_hbm [thread:$0]  %s3149_s12, 32, %s5657_s14, [#allocation3]  }
 0xb3d   :  { %3924 = dma.done.wait [#allocation3], 32  }
 0xb3e   :  { %3925 = vsyncadd [#allocation3], 4294967264 }
 0xb3f   :  { %3155 = vsyncpa [#allocation3], 1 }

</bundles_post_ra>
